<compile_context>
chip_gen: v6e
topology: v6e:2x2x1
jax: 0.10.0
libtpu: 0.0.40
codegen_flags: <defaults>
</compile_context>

<pallas_src>
import functools

import jax
import jax.numpy as jnp
from jax.experimental import pallas as pl
from jax.experimental.pallas import tpu as pltpu

NEG_INF = -1e30


def a2c_forward_kernel(num_actions,
                       x_ref, gumbel_ref, w1_ref, b1_ref, wh_ref, bh_ref,
                       out_ref):
    # x:      (TB, F)      f32
    # gumbel: (TB, A_PAD)  f32  (only lanes < num_actions matter)
    # w1:     (F, H)       bf16
    # b1:     (1, H)       f32
    # wh:     (H, A_PAD)   bf16  [cols 0..A-1 policy, col A value, rest zero]
    # bh:     (1, A_PAD)   f32
    # out:    (TB, 4)      f32   [action, log_prob, entropy, value]

    # ---- shared trunk: hidden = relu(x @ W1 + b1), bf16 MXU / f32 accum ----
    x = x_ref[...].astype(jnp.bfloat16)
    h = jnp.dot(x, w1_ref[...], preferred_element_type=jnp.float32)
    h = jnp.maximum(h + b1_ref[...], 0.0)                       # (TB, H) f32

    # ---- fused heads: one lane-dense 128-wide matmul ----
    head = jnp.dot(h.astype(jnp.bfloat16), wh_ref[...],
                   preferred_element_type=jnp.float32) + bh_ref[...]  # (TB, A_PAD)

    tb, a_pad = head.shape
    lane = jax.lax.broadcasted_iota(jnp.int32, (tb, a_pad), 1)
    valid = lane < num_actions

    # value lives in column `num_actions`
    value = jnp.sum(jnp.where(lane == num_actions, head, 0.0),
                    axis=-1, keepdims=True)                      # (TB, 1)

    # mask value column + padding out of the categorical distribution
    logits = jnp.where(valid, head, NEG_INF)                     # (TB, A_PAD)

    # ---- Categorical(logits): log-softmax pieces, f32 throughout ----
    m = jnp.max(logits, axis=-1, keepdims=True)
    z = logits - m                                               # padded -> ~-1e30
    ez = jnp.exp(z)                                              # padded -> exactly 0
    sez = jnp.sum(ez, axis=-1, keepdims=True)
    log_sez = jnp.log(sez)
    inv_sez = pl.reciprocal(sez, approx=True)                    # EUP slot

    # entropy = log(sez) - sum(ez*z)/sez   (no probs materialized)
    entropy = log_sez - jnp.sum(ez * z, axis=-1, keepdims=True) * inv_sez

    # ---- sample: Gumbel-max (padded lanes at -1e30 can never win) ----
    pert = logits + gumbel_ref[...]
    pmax = jnp.max(pert, axis=-1, keepdims=True)
    cand = jnp.where(pert == pmax, lane, a_pad)
    action = jnp.min(cand, axis=-1, keepdims=True)               # (TB, 1) i32

    # log_prob of the sampled action (one-hot gather on z, no logp_all tensor)
    sel = lane == action
    z_at_a = jnp.sum(jnp.where(sel, z, 0.0), axis=-1, keepdims=True)
    log_prob = z_at_a - log_sez                                  # (TB, 1)

    # ---- pack [action, log_prob, entropy, value] into one contiguous store ----
    lane4 = jax.lax.broadcasted_iota(jnp.int32, (tb, 4), 1)
    action_f = action.astype(jnp.float32)                        # exact: small ints
    packed = jnp.where(lane4 == 0, action_f,
             jnp.where(lane4 == 1, log_prob,
             jnp.where(lane4 == 2, entropy, value)))
    out_ref[...] = packed


def a2c_forward(state, gumbel, w1, b1, w_heads, b_heads, num_actions,
                *, block_b=128):
    """state: (B, F) f32, gumbel: (B, A_PAD) f32 standard Gumbel noise.

    Returns (action (B,1) i32, log_prob (B,1) f32, entropy (B,1) f32,
    value (B,1) f32) — the PyTorch A2C.forward training-mode contract.
    """
    B, F = state.shape
    H = w1.shape[1]
    a_pad = w_heads.shape[1]
    assert gumbel.shape == (B, a_pad)

    block_b = min(block_b, B)
    assert B % block_b == 0 and block_b % 8 == 0, "batch tile must divide B, %8"
    grid = (B // block_b,)

    kernel = functools.partial(a2c_forward_kernel, num_actions)

    packed = pl.pallas_call(
        kernel,
        out_shape=jax.ShapeDtypeStruct((B, 4), jnp.float32),
        grid_spec=pltpu.PrefetchScalarGridSpec(
            num_scalar_prefetch=0,
            grid=grid,
            in_specs=[
                pl.BlockSpec((block_b, F), lambda i: (i, 0)),      # state tile
                pl.BlockSpec((block_b, a_pad), lambda i: (i, 0)),  # gumbel tile
                pl.BlockSpec((F, H), lambda i: (0, 0)),            # w1 (resident)
                pl.BlockSpec((1, H), lambda i: (0, 0)),            # b1 (resident)
                pl.BlockSpec((H, a_pad), lambda i: (0, 0)),        # fused head W
                pl.BlockSpec((1, a_pad), lambda i: (0, 0)),        # fused head b
            ],
            out_specs=pl.BlockSpec((block_b, 4), lambda i: (i, 0)),
        ),
        compiler_params=pltpu.CompilerParams(
            # batch axis is embarrassingly parallel -> both TCs on v7x
            dimension_semantics=("parallel",),
        ),
    )(state, gumbel, w1, b1, w_heads, b_heads)

    action = packed[:, 0:1].astype(jnp.int32)
    log_prob = packed[:, 1:2]
    entropy = packed[:, 2:3]
    value = packed[:, 3:4]
    return action, log_prob, entropy, value


def init_params(key, feat, hidden, n_actions, a_pad=128):
    """MLP trunk + fused (policy|value|zero-pad) head, weights stored bf16."""
    assert n_actions + 1 <= a_pad
    k1, k2, k3 = jax.random.split(key, 3)
    s1 = 1.0 / jnp.sqrt(feat)
    s2 = 1.0 / jnp.sqrt(hidden)
    w1 = (jax.random.normal(k1, (feat, hidden), jnp.float32) * s1).astype(
        jnp.bfloat16)
    b1 = jnp.zeros((1, hidden), jnp.float32)
    wp = jax.random.normal(k2, (hidden, n_actions), jnp.float32) * s2
    wv = jax.random.normal(k3, (hidden, 1), jnp.float32) * s2
    w_heads = jnp.zeros((hidden, a_pad), jnp.float32)
    w_heads = w_heads.at[:, :n_actions].set(wp)
    w_heads = w_heads.at[:, n_actions:n_actions + 1].set(wv)
    w_heads = w_heads.astype(jnp.bfloat16)
    b_heads = jnp.zeros((1, a_pad), jnp.float32)   # bp and bv both init to 0
    return w1, b1, w_heads, b_heads


def _reference(state, gumbel, w1, b1, w_heads, b_heads, num_actions):
    """Pure-JAX reference following the same bf16-MXU / f32-elementwise path."""
    h = jnp.dot(state.astype(jnp.bfloat16), w1,
                preferred_element_type=jnp.float32) + b1
    h = jnp.maximum(h, 0.0)
    head = jnp.dot(h.astype(jnp.bfloat16), w_heads,
                   preferred_element_type=jnp.float32) + b_heads
    logits = head[:, :num_actions]
    value = head[:, num_actions:num_actions + 1]
    logp_all = jax.nn.log_softmax(logits, axis=-1)
    entropy = -jnp.sum(jnp.exp(logp_all) * logp_all, axis=-1, keepdims=True)
    return logp_all, entropy, value


if __name__ == "__main__":
    # Small demo shapes (still tile-aligned): 256 states, 128 features,
    # 128 hidden units, 8 discrete actions (head padded to 128 lanes).
    B, F, H, A = 256, 128, 128, 8
    A_PAD = 128
    TB = 128  # batch tile; small enough for v7x's 64 MiB VMEM, grid = 2

    key = jax.random.PRNGKey(0)
    k_state, k_params, k_gumbel = jax.random.split(key, 3)

    state = jax.random.normal(k_state, (B, F), jnp.float32)
    w1, b1, w_heads, b_heads = init_params(k_params, F, H, A, A_PAD)

    # Standard Gumbel noise for Categorical.sample() via the Gumbel-max trick
    # (generated lane-padded; lanes >= A are ignored by the kernel's mask).
    u = jax.random.uniform(k_gumbel, (B, A_PAD), jnp.float32,
                           minval=1e-6, maxval=1.0 - 1e-6)
    gumbel = -jnp.log(-jnp.log(u))

    action, log_prob, entropy, value = a2c_forward(
        state, gumbel, w1, b1, w_heads, b_heads, A, block_b=TB)
    jax.block_until_ready((action, log_prob, entropy, value))

    # ---- contract / numerical sanity checks ----
    assert action.shape == (B, 1) and action.dtype == jnp.int32
    assert log_prob.shape == (B, 1) and entropy.shape == (B, 1)
    assert value.shape == (B, 1)
    assert bool(jnp.all((action >= 0) & (action < A)))
    assert bool(jnp.all(log_prob <= 0.0))
    assert bool(jnp.all((entropy >= -1e-3) & (entropy <= jnp.log(A) + 1e-3)))

    logp_all_ref, ent_ref, val_ref = _reference(
        state, gumbel, w1, b1, w_heads, b_heads, A)
    # log_prob checked at the kernel's own sampled action (tie/precision safe)
    logp_ref_at_a = jnp.take_along_axis(logp_all_ref, action, axis=-1)
    assert bool(jnp.allclose(value, val_ref, atol=5e-2, rtol=5e-2))
    assert bool(jnp.allclose(entropy, ent_ref, atol=5e-2, rtol=5e-2))
    assert bool(jnp.allclose(log_prob, logp_ref_at_a, atol=5e-2, rtol=5e-2))

    # TODO(synk): eval-mode path (plain argmax, no sampling) and the n-step
    # GAE TransitionQueue/update() loop are host-side control flow over
    # Python queues/optimizer state, not kernelized here.

    print("KERNEL_OK")
</pallas_src>

<mosaic_0001>
module attributes {stable_mosaic.version = 11 : i64} {
  func.func @a2c_forward_kernel(%arg0: i32, %arg1: memref<128x128xf32, #tpu.memory_space<vmem>>, %arg2: memref<128x128xf32, #tpu.memory_space<vmem>>, %arg3: memref<128x128xbf16, #tpu.memory_space<vmem>>, %arg4: memref<1x128xf32, #tpu.memory_space<vmem>>, %arg5: memref<128x128xbf16, #tpu.memory_space<vmem>>, %arg6: memref<1x128xf32, #tpu.memory_space<vmem>>, %arg7: memref<128x4xf32, #tpu.memory_space<vmem>>) attributes {dimension_semantics = [#tpu.dimension_semantics<parallel>], iteration_bounds = array<i64: 2>, scalar_prefetch = 0 : i64, scratch_operands = 0 : i64, tpu.core_type = #tpu.core_type<tc>, window_params = [{transform_indices = @transform_0, window_bounds = array<i64: 128, 128>}, {transform_indices = @transform_1, window_bounds = array<i64: 128, 128>}, {pipeline_mode = #tpu.pipeline_mode<synchronous>, transform_indices = @transform_2, window_bounds = array<i64: 128, 128>}, {pipeline_mode = #tpu.pipeline_mode<synchronous>, transform_indices = @transform_3, window_bounds = array<i64: 1, 128>}, {pipeline_mode = #tpu.pipeline_mode<synchronous>, transform_indices = @transform_4, window_bounds = array<i64: 128, 128>}, {pipeline_mode = #tpu.pipeline_mode<synchronous>, transform_indices = @transform_5, window_bounds = array<i64: 1, 128>}, {transform_indices = @transform_6, window_bounds = array<i64: 128, 4>}]} {
    %c0 = arith.constant 0 : index
    %c0_0 = arith.constant 0 : index
    %0 = vector.load %arg1[%c0, %c0_0] : memref<128x128xf32, #tpu.memory_space<vmem>>, vector<128x128xf32>
    %1 = arith.truncf %0 : vector<128x128xf32> to vector<128x128xbf16>
    %c0_1 = arith.constant 0 : index
    %c0_2 = arith.constant 0 : index
    %2 = vector.load %arg3[%c0_1, %c0_2] : memref<128x128xbf16, #tpu.memory_space<vmem>>, vector<128x128xbf16>
    %cst = arith.constant dense<0.000000e+00> : vector<128x128xf32>
    %3 = tpu.matmul %1, %2, %cst {dimension_numbers = #tpu.dot_dimension_numbers<[1], [0], [0], [1], [0, 0, 1, 1], [], []>} : vector<128x128xbf16>, vector<128x128xbf16>, vector<128x128xf32> -> vector<128x128xf32>
    %c0_3 = arith.constant 0 : index
    %c0_4 = arith.constant 0 : index
    %4 = vector.load %arg4[%c0_3, %c0_4] : memref<1x128xf32, #tpu.memory_space<vmem>>, vector<1x128xf32>
    %5 = vector.broadcast %4 : vector<1x128xf32> to vector<128x128xf32>
    %6 = arith.addf %3, %5 : vector<128x128xf32>
    %cst_5 = arith.constant 0.000000e+00 : f32
    %7 = vector.broadcast %cst_5 : f32 to vector<128x128xf32>
    %8 = arith.maximumf %6, %7 : vector<128x128xf32>
    %9 = arith.truncf %8 : vector<128x128xf32> to vector<128x128xbf16>
    %c0_6 = arith.constant 0 : index
    %c0_7 = arith.constant 0 : index
    %10 = vector.load %arg5[%c0_6, %c0_7] : memref<128x128xbf16, #tpu.memory_space<vmem>>, vector<128x128xbf16>
    %cst_8 = arith.constant dense<0.000000e+00> : vector<128x128xf32>
    %11 = tpu.matmul %9, %10, %cst_8 {dimension_numbers = #tpu.dot_dimension_numbers<[1], [0], [0], [1], [0, 0, 1, 1], [], []>} : vector<128x128xbf16>, vector<128x128xbf16>, vector<128x128xf32> -> vector<128x128xf32>
    %c0_9 = arith.constant 0 : index
    %c0_10 = arith.constant 0 : index
    %12 = vector.load %arg6[%c0_9, %c0_10] : memref<1x128xf32, #tpu.memory_space<vmem>>, vector<1x128xf32>
    %13 = vector.broadcast %12 : vector<1x128xf32> to vector<128x128xf32>
    %14 = arith.addf %11, %13 : vector<128x128xf32>
    %15 = tpu.iota {dimensions = array<i32: 1>} : vector<128x128xi32>
    %c8_i32 = arith.constant 8 : i32
    %16 = vector.broadcast %c8_i32 : i32 to vector<128x128xi32>
    %17 = arith.cmpi slt, %15, %16 : vector<128x128xi32>
    %c8_i32_11 = arith.constant 8 : i32
    %18 = vector.broadcast %c8_i32_11 : i32 to vector<128x128xi32>
    %19 = arith.cmpi eq, %15, %18 : vector<128x128xi32>
    %cst_12 = arith.constant 0.000000e+00 : f32
    %20 = vector.broadcast %cst_12 : f32 to vector<128x128xf32>
    %21 = arith.select %19, %14, %20 : vector<128x128xi1>, vector<128x128xf32>
    %cst_13 = arith.constant dense<0.000000e+00> : vector<128xf32>
    %22 = vector.multi_reduction <add>, %21, %cst_13 [1] : vector<128x128xf32> to vector<128xf32>
    %23 = vector.shape_cast %22 : vector<128xf32> to vector<128x1xf32>
    %cst_14 = arith.constant -1.000000e+30 : f32
    %24 = vector.broadcast %cst_14 : f32 to vector<128x128xf32>
    %25 = arith.select %17, %14, %24 : vector<128x128xi1>, vector<128x128xf32>
    %cst_15 = arith.constant dense<0xFF800000> : vector<128xf32>
    %26 = vector.multi_reduction <maximumf>, %25, %cst_15 [1] : vector<128x128xf32> to vector<128xf32>
    %27 = vector.shape_cast %26 : vector<128xf32> to vector<128x1xf32>
    %28 = vector.broadcast %27 : vector<128x1xf32> to vector<128x128xf32>
    %29 = arith.subf %25, %28 : vector<128x128xf32>
    %30 = math.exp %29 : vector<128x128xf32>
    %cst_16 = arith.constant dense<0.000000e+00> : vector<128xf32>
    %31 = vector.multi_reduction <add>, %30, %cst_16 [1] : vector<128x128xf32> to vector<128xf32>
    %32 = vector.shape_cast %31 : vector<128xf32> to vector<128x1xf32>
    %33 = math.log %32 : vector<128x1xf32>
    %34 = tpu.reciprocal %32 {approx = true} : vector<128x1xf32> -> vector<128x1xf32>
    %35 = arith.mulf %30, %29 : vector<128x128xf32>
    %cst_17 = arith.constant dense<0.000000e+00> : vector<128xf32>
    %36 = vector.multi_reduction <add>, %35, %cst_17 [1] : vector<128x128xf32> to vector<128xf32>
    %37 = vector.shape_cast %36 : vector<128xf32> to vector<128x1xf32>
    %38 = arith.mulf %37, %34 : vector<128x1xf32>
    %39 = arith.subf %33, %38 : vector<128x1xf32>
    %c0_18 = arith.constant 0 : index
    %c0_19 = arith.constant 0 : index
    %40 = vector.load %arg2[%c0_18, %c0_19] : memref<128x128xf32, #tpu.memory_space<vmem>>, vector<128x128xf32>
    %41 = arith.addf %25, %40 : vector<128x128xf32>
    %cst_20 = arith.constant dense<0xFF800000> : vector<128xf32>
    %42 = vector.multi_reduction <maximumf>, %41, %cst_20 [1] : vector<128x128xf32> to vector<128xf32>
    %43 = vector.shape_cast %42 : vector<128xf32> to vector<128x1xf32>
    %44 = vector.broadcast %43 : vector<128x1xf32> to vector<128x128xf32>
    %45 = arith.cmpf oeq, %41, %44 : vector<128x128xf32>
    %c128_i32 = arith.constant 128 : i32
    %46 = vector.broadcast %c128_i32 : i32 to vector<128x128xi32>
    %47 = arith.select %45, %15, %46 : vector<128x128xi1>, vector<128x128xi32>
    %cst_21 = arith.constant dense<2147483647> : vector<128xi32>
    %48 = vector.multi_reduction <minsi>, %47, %cst_21 [1] : vector<128x128xi32> to vector<128xi32>
    %49 = vector.shape_cast %48 : vector<128xi32> to vector<128x1xi32>
    %50 = vector.broadcast %49 : vector<128x1xi32> to vector<128x128xi32>
    %51 = arith.cmpi eq, %15, %50 : vector<128x128xi32>
    %cst_22 = arith.constant 0.000000e+00 : f32
    %52 = vector.broadcast %cst_22 : f32 to vector<128x128xf32>
    %53 = arith.select %51, %29, %52 : vector<128x128xi1>, vector<128x128xf32>
    %cst_23 = arith.constant dense<0.000000e+00> : vector<128xf32>
    %54 = vector.multi_reduction <add>, %53, %cst_23 [1] : vector<128x128xf32> to vector<128xf32>
    %55 = vector.shape_cast %54 : vector<128xf32> to vector<128x1xf32>
    %56 = arith.subf %55, %33 : vector<128x1xf32>
    %57 = tpu.iota {dimensions = array<i32: 1>} : vector<128x4xi32>
    %58 = arith.sitofp %49 : vector<128x1xi32> to vector<128x1xf32>
    %c0_i32 = arith.constant 0 : i32
    %59 = vector.broadcast %c0_i32 : i32 to vector<128x4xi32>
    %60 = arith.cmpi eq, %57, %59 : vector<128x4xi32>
    %c1_i32 = arith.constant 1 : i32
    %61 = vector.broadcast %c1_i32 : i32 to vector<128x4xi32>
    %62 = arith.cmpi eq, %57, %61 : vector<128x4xi32>
    %c2_i32 = arith.constant 2 : i32
    %63 = vector.broadcast %c2_i32 : i32 to vector<128x4xi32>
    %64 = arith.cmpi eq, %57, %63 : vector<128x4xi32>
    %65 = vector.shape_cast %39 : vector<128x1xf32> to vector<128x1xf32>
    %66 = vector.broadcast %65 : vector<128x1xf32> to vector<128x4xf32>
    %67 = vector.shape_cast %23 : vector<128x1xf32> to vector<128x1xf32>
    %68 = vector.broadcast %67 : vector<128x1xf32> to vector<128x4xf32>
    %69 = arith.select %64, %66, %68 : vector<128x4xi1>, vector<128x4xf32>
    %70 = vector.shape_cast %56 : vector<128x1xf32> to vector<128x1xf32>
    %71 = vector.broadcast %70 : vector<128x1xf32> to vector<128x4xf32>
    %72 = arith.select %62, %71, %69 : vector<128x4xi1>, vector<128x4xf32>
    %73 = vector.shape_cast %58 : vector<128x1xf32> to vector<128x1xf32>
    %74 = vector.broadcast %73 : vector<128x1xf32> to vector<128x4xf32>
    %75 = arith.select %60, %74, %72 : vector<128x4xi1>, vector<128x4xf32>
    %c0_24 = arith.constant 0 : index
    %c0_25 = arith.constant 0 : index
    %76 = vector.load %arg7[%c0_24, %c0_25] : memref<128x4xf32, #tpu.memory_space<vmem>>, vector<128x4xf32>
    tpu.vector_store %arg7[%c0_24, %c0_25], %75 {strides = array<i32>} : memref<128x4xf32, #tpu.memory_space<vmem>>, vector<128x4xf32>,
    return
  }
  func.func @transform_0(%arg0: i32) -> (i32, i32) {
    %c0_i32 = arith.constant 0 : i32
    %c0_i32_0 = arith.constant 0 : i32
    return %arg0, %c0_i32 : i32, i32
  }
  func.func @transform_1(%arg0: i32) -> (i32, i32) {
    %c0_i32 = arith.constant 0 : i32
    %c0_i32_0 = arith.constant 0 : i32
    return %arg0, %c0_i32 : i32, i32
  }
  func.func @transform_2(%arg0: i32) -> (i32, i32) {
    %c0_i32 = arith.constant 0 : i32
    %c0_i32_0 = arith.constant 0 : i32
    %c0_i32_1 = arith.constant 0 : i32
    return %c0_i32, %c0_i32_0 : i32, i32
  }
  func.func @transform_3(%arg0: i32) -> (i32, i32) {
    %c0_i32 = arith.constant 0 : i32
    %c0_i32_0 = arith.constant 0 : i32
    %c0_i32_1 = arith.constant 0 : i32
    return %c0_i32, %c0_i32_0 : i32, i32
  }
  func.func @transform_4(%arg0: i32) -> (i32, i32) {
    %c0_i32 = arith.constant 0 : i32
    %c0_i32_0 = arith.constant 0 : i32
    %c0_i32_1 = arith.constant 0 : i32
    return %c0_i32, %c0_i32_0 : i32, i32
  }
  func.func @transform_5(%arg0: i32) -> (i32, i32) {
    %c0_i32 = arith.constant 0 : i32
    %c0_i32_0 = arith.constant 0 : i32
    %c0_i32_1 = arith.constant 0 : i32
    return %c0_i32, %c0_i32_0 : i32, i32
  }
  func.func @transform_6(%arg0: i32) -> (i32, i32) {
    %c0_i32 = arith.constant 0 : i32
    %c0_i32_0 = arith.constant 0 : i32
    return %arg0, %c0_i32 : i32, i32
  }
}

</mosaic_0001>

<bundles_post_ra>
// kernel: tpu_custom_call.1
= control target key start
LH: loop header
LB: loop body
LE: loop exit
PB: predicated region body
PF: predicated region fallthrough
CT: control target
= control target key end

     0   :  { %11 = vsyncpa [#allocation3], 0  ;;  %s3384_s0 = inlined_call_operand.hbm [shape: f32[256,128], index: 0, kind: input, shape index: {}]   ;;  %s3385_s1 = inlined_call_operand.hbm [shape: f32[256,128], index: 1, kind: input, shape index: {}]   ;;  %s3386_s2 = inlined_call_operand.hbm [shape: bf16[128,128], index: 2, kind: input, shape index: {}]   ;;  %s3387_s3 = inlined_call_operand.vmem [shape: f32[1,128], index: 3, kind: input, shape index: {}]   ;;  %s3388_s4 = inlined_call_operand.hbm [shape: bf16[128,128], index: 4, kind: input, shape index: {}]   ;;  %s3389_s5 = inlined_call_operand.vmem [shape: f32[1,128], index: 5, kind: input, shape index: {}]   ;;  %s3390_s6 = inlined_call_operand.vmem [shape: f32[256,4], index: 6, kind: output, shape index: {}]  }
   0x1   :  { %13 = vsyncpa [#allocation3 + $0x1], 0 }
   0x2   :  { %14 = vsyncpa [#allocation5], 0 }
   0x3   :  { %16 = vsyncpa [#allocation5 + $0x1], 0 }
   0x4   :  { %17 = vsyncpa [#allocation8], 0  ;;  %s2147_s21 = smov 0   ;;  %s2149_s22 = smov 0  }
   0x5   :  { %s2151_s23 = smov 0   ;;  %s2153_s24 = smov 0  }
   0x6 LB: > { %s2166_s25 = sadd.s32 4294967295, %s2102_s24   ;;  %p43_p0 = scmp.ne.s32.totalorder %s2094_s22, %s2090_s21  ;;  %s2102_s24 = sphi %s2153_s24, %s3459_s24   ;;  %s2098_s23 = sphi %s2151_s23, %s3458_s23   ;;  %s2094_s22 = sphi %s2149_s22, %s3457_s22   ;;  %s2090_s21 = sphi %s2147_s21, %s3456_s21  }
   0x7   : > { %p3391_p1 = scmp.eq.s32.totalorder %s2166_s25, 0  ;;  %p1632_p2 = scmp.ge.s32.totalorder %s2102_s24, 1 }
   0x8   : > { %p190_p3 = scmp.lt.s32.totalorder %s2102_s24, 3  ;;  %s2104_s28 = smov [#allocation6]  }
   0x9   : > { %p2174_p4 = por %p3391_p1, %p43_p0  ;;  %s202_s29 = sshll.u32 %s2104_s28, 4  ;;  %s203_s29 = int_to_ptr.vmem [resolvable:$true] %s202_s29 }
   0xa   : > { %p2178_p5 = pnand %p1632_p2, %p190_p3  ;;  %s2105_s7 = smov [#allocation7]  }
   0xb   : > { %s3408_s26 = scalar_select %p2174_p4, 1, 0 }
   0xc   : > { %p1779_p6 = pneg %p2178_p5  ;;  %s218_s8 = sshll.u32 %s2105_s7, 4  ;;  %s219_s8 = int_to_ptr.vmem [resolvable:$true] %s218_s8 }
   0xd   : > { %s1959_s9 = scalar_lea.vmem %s203_s29, 1024  ;;  %p1967_p12 = scmp.lt.s32.totalorder %s203_s29, %s203_s29 }
   0xe   : > { %p2186_p7 = pnand %p1779_p6, %p3391_p1  ;;  %p1960_p9 = scmp.ne.s32.totalorder %s203_s29, %s1959_s9 }
   0xf   : > { %p1968_p13 = scmp.lt.s32.totalorder %s1959_s9, %s1959_s9 }
  0x10   : > { %p1950_p8 = pneg %p2186_p7 }
  0x11   : > { %p1969_p0 = por %p1968_p13, %p1967_p12 }
  0x12   : > { %p1962_p10 = pnand %p1960_p9, %p1950_p8 }
  0x14   : > { %p1963_p11 = pneg %p1962_p10 }
  0x16   : > { %p1970_p2 = pnand %p1969_p0, %p1963_p11 }
  0x18   : > { %1973 = shalt.err (!%p1970_p2)
}
  0x19   : > { %s2106_s10 = smov 64   ;;  %s2107_s11 = smov 4  }
  0x1a   : > { %1782 = dma.hbm_to_vmem [thread:$0]  (!%p2186_p7), %s3386_s2, 1024, %s203_s29, [#allocation5], %s2106_s10, %s2106_s10, %s2107_s11  }
  0x1b   : > { %s1985_s14 = scalar_lea.vmem %s219_s8, 1024  ;;  %p1993_p10 = scmp.lt.s32.totalorder %s219_s8, %s219_s8 }
  0x1c   : > { %p1986_p3 = scmp.ne.s32.totalorder %s219_s8, %s1985_s14  ;;  %p1994_p1 = scmp.lt.s32.totalorder %s1985_s14, %s1985_s14 }
  0x1e   : > { %p1988_p6 = pnand %p1986_p3, %p1950_p8  ;;  %p1995_p12 = por %p1994_p1, %p1993_p10 }
  0x20   : > { %p1989_p9 = pneg %p1988_p6 }
  0x22   : > { %p1996_p11 = pnand %p1995_p12, %p1989_p9 }
  0x24   : > { %1999 = shalt.err (!%p1996_p11)
}
  0x25   : > { %1785 = dma.hbm_to_vmem [thread:$0]  (!%p2186_p7), %s3388_s4, 1024, %s219_s8, [#allocation8], %s2106_s10, %s2106_s10, %s2107_s11  }
  0x26   : > { %s2209_s17 = sadd.s32 1, %s2102_s24   ;;  %s30_s18 = sadd.s32 1, %s2098_s23 }
  0x27   : > { %s27_s19 = ssub.s32 %s2102_s24, %s2209_s17  ;;  %p37_p1 = scmp.ne.s32.totalorder %s2098_s23, %s2094_s22 }
  0x28   : > { %p28_p8 = scmp.eq.s32.totalorder %s27_s19, 0  ;;  %p38_p13 = scmp.eq.s32.totalorder %s2102_s24, 0 }
  0x29   : > { %p1795_p0 = scmp.lt.s32.totalorder %s2102_s24, 2  ;;  %s235_s20 = sand.u32 1, %s2098_s23  }
  0x2a   : > { %s2220_s21 = scalar_select %p28_p8, %s2098_s23, %s30_s18  }
  0x2b   : > { %p39_p2 = por %p38_p13, %p37_p1  ;;  %s2222_s28 = sshll.u32 %s235_s20, 7 }
  0x2c   : > { %s1669_s29 = sshll.u32 %s2102_s24, 11  ;;  %s239_s9 = scalar_lea.vmem [#allocation2], %s2222_s28 }
  0x2d   : > { %s2230_s8 = scalar_lea.hbm %s3384_s0, %s1669_s29  ;;  %s246_s10 = sshll.u32 %s239_s9, 4  ;;  %s2237_s10 = int_to_ptr.vmem [resolvable:$true] %s246_s10 }
  0x2e   : > { %p2233_p7 = pnand %p1795_p0, %p39_p2  ;;  %s2239_s12 = scalar_lea.sflag [#allocation3], %s235_s20 }
  0x2f   : > { %s2000_s13 = scalar_lea.hbm %s2230_s8, 2048  ;;  %s2005_s16 = scalar_lea.hbm %s3384_s0, 4096 }
  0x30   : > { %p2001_p3 = scmp.ne.s32.totalorder %s2230_s8, %s2000_s13  ;;  %p2002_p6 = pneg %p2233_p7 }
  0x31   : > { %p2006_p12 = scmp.lt.s32.totalorder %s2230_s8, %s3384_s0  ;;  %p2007_p11 = scmp.lt.s32.totalorder %s2005_s16, %s2000_s13 }
  0x32   : > { %p2003_p9 = pnand %p2002_p6, %p2001_p3 }
  0x33   : > { %p2008_p1 = por %p2007_p11, %p2006_p12 }
  0x34   : > { %p2004_p10 = pneg %p2003_p9 }
  0x36   : > { %p2009_p8 = pnand %p2008_p1, %p2004_p10 }
  0x38   : > { %2012 = shalt.err (!%p2009_p8)
}
  0x39   : > { %s2013_s20 = scalar_lea.vmem %s2237_s10, 2048  ;;  %s2108_s30 = smov [#allocation2]  }
  0x3a   : > { %p2014_p13 = scmp.ne.s32.totalorder %s2237_s10, %s2013_s20  ;;  %s2018_s7 = sshll.u32 %s2108_s30, 4  ;;  %s2019_s7 = int_to_ptr.vmem [resolvable:$false] %s2018_s7 }
  0x3b   : > { %s2020_s9 = scalar_lea.vmem %s2019_s7, 4096  ;;  %p2021_p3 = scmp.lt.s32.totalorder %s2237_s10, %s2019_s7 }
  0x3c   : > { %p2016_p0 = pnand %p2014_p13, %p2002_p6  ;;  %p2022_p9 = scmp.lt.s32.totalorder %s2020_s9, %s2013_s20 }
  0x3e   : > { %p2017_p2 = pneg %p2016_p0  ;;  %p2023_p4 = por %p2022_p9, %p2021_p3 }
  0x40   : > { %p2024_p12 = pnand %p2023_p4, %p2017_p2 }
  0x42   : > { %2027 = shalt.err (!%p2024_p12)
}
  0x43   : > { %s2109_s13 = smov 128   ;;  %s2110_s14 = smov 8  }
  0x44   : > { %1789 = dma.hbm_to_vmem [thread:$0]  (!%p2233_p7), %s2230_s8, 2048, %s2237_s10, %s2239_s12, %s2109_s13, %s2109_s13, %s2110_s14  }
  0x45   : > { %s2274_s18 = scalar_lea.hbm %s3385_s1, %s1669_s29  ;;  %s260_s19 = scalar_lea.vmem [#allocation4], %s2222_s28 }
  0x46   : > { %s267_s20 = sshll.u32 %s260_s19, 4  ;;  %s256_s30 = sand.u32 1, %s2102_s24   ;;  %s2278_s20 = int_to_ptr.vmem [resolvable:$true] %s267_s20 }
  0x47   : > { %s257_s7 = scalar_lea.sflag [#allocation5], %s256_s30  ;;  %s2028_s9 = scalar_lea.hbm %s2274_s18, 2048 }
  0x48   : > { %p2029_p4 = scmp.ne.s32.totalorder %s2274_s18, %s2028_s9  ;;  %s2033_s29 = scalar_lea.hbm %s3385_s1, 4096 }
  0x49   : > { %p2034_p1 = scmp.lt.s32.totalorder %s2274_s18, %s3385_s1  ;;  %p2035_p8 = scmp.lt.s32.totalorder %s2033_s29, %s2028_s9 }
  0x4a   : > { %p2031_p10 = pnand %p2029_p4, %p2002_p6 }
  0x4b   : > { %p2036_p13 = por %p2035_p8, %p2034_p1 }
  0x4c   : > { %p2032_p11 = pneg %p2031_p10 }
  0x4e   : > { %p2037_p0 = pnand %p2036_p13, %p2032_p11 }
  0x50   : > { %2040 = shalt.err (!%p2037_p0)
}
  0x51   : > { %s2041_s24 = scalar_lea.vmem %s2278_s20, 2048  ;;  %s2111_s28 = smov [#allocation4]  }
  0x52   : > { %p2042_p2 = scmp.ne.s32.totalorder %s2278_s20, %s2041_s24  ;;  %s2046_s16 = sshll.u32 %s2111_s28, 4  ;;  %s2047_s16 = int_to_ptr.vmem [resolvable:$false] %s2046_s16 }
  0x53   : > { %s2048_s19 = scalar_lea.vmem %s2047_s16, 4096  ;;  %p2049_p12 = scmp.lt.s32.totalorder %s2278_s20, %s2047_s16 }
  0x54   : > { %p2044_p3 = pnand %p2042_p2, %p2002_p6  ;;  %p2050_p4 = scmp.lt.s32.totalorder %s2048_s19, %s2041_s24 }
  0x56   : > { %p2045_p9 = pneg %p2044_p3  ;;  %p2051_p10 = por %p2050_p4, %p2049_p12 }
  0x58   : > { %p2052_p1 = pnand %p2051_p10, %p2045_p9 }
  0x5a   : > { %2055 = shalt.err (!%p2052_p1)
}
  0x5b   : > { %1792 = dma.hbm_to_vmem [thread:$0]  (!%p2233_p7), %s2274_s18, 2048, %s2278_s20, %s257_s7, %s2109_s13, %s2109_s13, %s2110_s14  }
  0x5c   : > { %279 = sbr.rel (%p2178_p5) target bundleno = 1154 (0x482), region = 44 }
  0x61   : > { %s281_s30 = sand.u32 1, %s2094_s22   ;;  %p3412_p6 = scmp.ne.s32.totalorder %s3408_s26, 0 }
  0x62   : > { %s1643_s9 = sshll.u32 %s281_s30, 7  ;;  %s282_s8 = scalar_lea.sflag [#allocation3], %s281_s30 }
  0x63   : > { %s2308_s10 = scalar_lea.vmem [#allocation2], %s1643_s9 }
  0x64   : > { %2073 = dma.done.wait (%p3412_p6), %s282_s8, 2048  }
  0x65   : > { %2075 = vsyncadd (%p3412_p6), %s282_s8, 4294965248  ;;  %s290_s11 = sand.u32 1, %s2166_s25   ;;  %s2315_s13 = scalar_lea.vmem [#allocation4], %s1643_s9 }
  0x66   : > { %s291_s29 = scalar_lea.sflag [#allocation5], %s290_s11 }
  0x67   : > { %2077 = dma.done.wait (%p3412_p6), %s291_s29, 2048  }
  0x68   : > { %2079 = vsyncadd (%p3412_p6), %s291_s29, 4294965248  ;;  %p3413_p5 = scmp.eq.s32.totalorder %s2166_s25, 0 }
  0x6a   : > { %2081 = dma.done.wait (%p3413_p5), [#allocation5], 1024   ;;  %p3414_p7 = pmov %p3413_p5 }
  0x6b   : > { %p3415_p11 = pmov %p3413_p5 }
  0x6c   : > { %2083 = vsyncadd (%p3414_p7), [#allocation5], 4294966272 }
  0x6d   : > { %2085 = dma.done.wait (%p3415_p11), [#allocation8], 1024   ;;  %p3416_p8 = pmov %p3413_p5 }
  0x6e   : > { %v1836_v0 = vld [vmem:[#allocation6 + $0x38] sm:$0xff]   ;;  %v1837_v1 = vld [vmem:[#allocation6 + $0x30] sm:$0xff]   ;;  %v1838_v2 = vld [vmem:[#allocation6 + $0x28] sm:$0xff]   ;;  %s1647_s20 = sshll.u32 %s2166_s25, 4 }
  0x6f   : > { %2087 = vsyncadd (%p3416_p8), [#allocation8], 4294966272  ;;  %1703 = vmatprep.subr.bf16.mxu0 %v1836_v0  ;;  %v1839_v3 = vld [vmem:[#allocation6 + $0x20] sm:$0xff]   ;;  %v346_v5 = vld [vmem:[%s2308_s10 + $0x8] sm:$0xff]  ;;  %p339_p13 = scmp.lt.s32.totalorder %s1647_s20, 31 }
  0x70   : > { %1704 = vmatpush3.bf16.msra.mxu0 %v1836_v0  ;;  %v345_v4 = vld [vmem:[%s2308_s10] sm:$0xff]  ;;  %v1840_v7 = vld [vmem:[#allocation6 + $0x18] sm:$0xff]   ;;  %v1845_v9 = vld [vmem:[#allocation7 + $0x30] sm:$0xff]  }
  0x71   : > { %1705 = vmatprep.subr.bf16.mxu0 %v1837_v1  ;;  %v361_v6 = vpack.c.bf16 %v346_v5, %v345_v4  ;;  %v1844_v8 = vld [vmem:[#allocation7 + $0x38] sm:$0xff]   ;;  %v1841_v10 = vld [vmem:[#allocation6 + $0x10] sm:$0xff]   ;;  %v1846_v11 = vld [vmem:[#allocation7 + $0x28] sm:$0xff]   ;;  %s3461_s20 = smov (!%p339_p13, %s1647_s20), 31 }
  0x72   : > { %1735 = vmatprep.subr.bf16.mxu1 %v1844_v8  ;;  %v1842_v12 = vld [vmem:[#allocation6 + $0x8] sm:$0xff]   ;;  %v1847_v13 = vld [vmem:[#allocation7 + $0x20] sm:$0xff]   ;;  %v1848_v15 = vld [vmem:[#allocation7 + $0x18] sm:$0xff]   ;;  %s1648_s25 = sshll.u32 %s3461_s20, 3 }
  0x73   : > { %1719 = vmatprep.mubr.bf16.mxu0 %v361_v6  ;;  %1736 = vmatpush3.bf16.msra.mxu1 %v1844_v8  ;;  %v1843_v14 = vld [vmem:[#allocation6] sm:$0xff]   ;;  %v347_v16 = vld [vmem:[%s2308_s10 + $0x10] sm:$0xff]  ;;  %v348_v17 = vld [vmem:[%s2308_s10 + $0x18] sm:$0xff]  ;;  %s3178_s15 = scalar_lea.vmem %s3390_s6, %s1648_s25 }
  0x74   : > { %1706 = vmatpush3.bf16.msra.mxu0 %v1837_v1  ;;  %1737 = vmatprep.subr.bf16.mxu1 %v1845_v9  ;;  %v349_v18 = vld [vmem:[%s2308_s10 + $0x20] sm:$0xff]  ;;  %v350_v19 = vld [vmem:[%s2308_s10 + $0x28] sm:$0xff]  ;;  %v362_v20 = vpack.c.bf16 %v348_v17, %v347_v16  ;;  %v351_v22 = vld [vmem:[%s2308_s10 + $0x30] sm:$0xff] }
  0x75   : > { %1707 = vmatprep.subr.bf16.mxu0 %v1838_v2  ;;  %v363_v21 = vpack.c.bf16 %v350_v19, %v349_v18  ;;  %v352_v23 = vld [vmem:[%s2308_s10 + $0x38] sm:$0xff]  ;;  %v353_v24 = vld [vmem:[%s2308_s10 + $0x40] sm:$0xff]  ;;  %v354_v25 = vld [vmem:[%s2308_s10 + $0x48] sm:$0xff] }
  0x76   : > { %v364_v26 = vpack.c.bf16 %v352_v23, %v351_v22  ;;  %v365_v27 = vpack.c.bf16 %v354_v25, %v353_v24  ;;  %v355_v28 = vld [vmem:[%s2308_s10 + $0x50] sm:$0xff]  ;;  %v356_v29 = vld [vmem:[%s2308_s10 + $0x58] sm:$0xff]  ;;  %v357_v30 = vld [vmem:[%s2308_s10 + $0x60] sm:$0xff] }
  0x77   : > { %1738 = vmatpush3.bf16.msra.mxu1 %v1845_v9  ;;  %v358_v31 = vld [vmem:[%s2308_s10 + $0x68] sm:$0xff]  ;;  %v366_v32 = vpack.c.bf16 %v356_v29, %v355_v28  ;;  %v359_v34 = vld [vmem:[%s2308_s10 + $0x70] sm:$0xff]  ;;  %v360_v35 = vld [vmem:[%s2308_s10 + $0x78] sm:$0xff] }
  0x78   : > { %1708 = vmatpush3.bf16.msra.mxu0 %v1838_v2  ;;  %1739 = vmatprep.subr.bf16.mxu1 %v1846_v11  ;;  %v367_v33 = vpack.c.bf16 %v358_v31, %v357_v30  ;;  %v368_v36 = vpack.c.bf16 %v360_v35, %v359_v34  ;;  %v1849_v37 = vld [vmem:[#allocation7 + $0x10] sm:$0xff]   ;;  %v1850_v38 = vld [vmem:[#allocation7 + $0x8] sm:$0xff]   ;;  %v1851_v39 = vld [vmem:[#allocation7] sm:$0xff]  }
  0x79   : > { %1709 = vmatprep.subr.bf16.mxu0 %v1839_v3  ;;  %v1649_v42 = vld [vmem:[%s3387_s3] ss:$0 sm:$0xff] }
  0x7a   : > { %v2353_v35 = vld [vmem:[%s3389_s5] ss:$0 sm:$0xff] }
  0x7b   : > { %1740 = vmatpush3.bf16.msra.mxu1 %v1846_v11 }
  0x7c   : > { %1710 = vmatpush3.bf16.msra.mxu0 %v1839_v3  ;;  %1741 = vmatprep.subr.bf16.mxu1 %v1847_v13 }
  0x7d   : > { %1711 = vmatprep.subr.bf16.mxu0 %v1840_v7 }
  0x7f   : > { %1742 = vmatpush3.bf16.msra.mxu1 %v1847_v13 }
  0x80   : > { %1712 = vmatpush3.bf16.msra.mxu0 %v1840_v7  ;;  %1743 = vmatprep.subr.bf16.mxu1 %v1848_v15 }
  0x81   : > { %1713 = vmatprep.subr.bf16.mxu0 %v1841_v10 }
  0x83   : > { %1744 = vmatpush3.bf16.msra.mxu1 %v1848_v15 }
  0x84   : > { %1714 = vmatpush3.bf16.msra.mxu0 %v1841_v10  ;;  %1745 = vmatprep.subr.bf16.mxu1 %v1849_v37 }
  0x85   : > { %1715 = vmatprep.subr.bf16.mxu0 %v1842_v12 }
  0x87   : > { %1746 = vmatpush3.bf16.msra.mxu1 %v1849_v37 }
  0x88   : > { %1716 = vmatpush3.bf16.msra.mxu0 %v1842_v12  ;;  %1747 = vmatprep.subr.bf16.mxu1 %v1850_v38 }
  0x89   : > { %1717 = vmatprep.subr.bf16.mxu0 %v1843_v14 }
  0x8b   : > { %1748 = vmatpush3.bf16.msra.mxu1 %v1850_v38  ;;  %v1039_v38 = vld [vmem:[%s2315_s13 + $0x10] sm:$0xff] }
  0x8c   : > { %1718 = vmatpush3.bf16.msra.mxu0 %v1843_v14  ;;  %1749 = vmatprep.subr.bf16.mxu1 %v1851_v39 }
  0x8f   : > { %1720 = vmatmul.mubr.bf16.vlgmr.msra.gmra.mxu0 %v362_v20  ;;  %1750 = vmatpush3.bf16.msra.mxu1 %v1851_v39 }
  0x90   : > { %1723 = vmatprep.mubr.bf16.mxu0 %v363_v21 }
  0x97   : > { %1724 = vmatmul.mubr.bf16.gmra.mxu0 %v364_v26 }
  0x98   : > { %1727 = vmatprep.mubr.bf16.mxu0 %v365_v27 }
  0x9f   : > { %1728 = vmatmul.mubr.bf16.gmra.mxu0 %v366_v32 }
  0xa0   : > { %1731 = vmatprep.mubr.bf16.mxu0 %v367_v33  ;;  %v729_v33 = vlaneseq }
  0xa2   : > { %v2348_v34 = vand.u32 127, %v729_v33 }
  0xa4   : > { %3417 = vst [vmem:[#allocation13_spill] sm:$0xff] %v2348_v34  ;;  %vm731_vm0 = vcmp.lt.s32.totalorder %v2348_v34, 8  ;;  %vm732_vm1 = vcmp.eq.s32.totalorder %v2348_v34, 8 }
  0xa7   : > { %1732 = vmatmul.mubr.bf16.gmra.mxu0 %v368_v36 }
 0x14f   : > { %v1721_v40 = vpop.f32.mrf.mxu0 }
 0x150   : > { %v483_v46 = vadd.f32 %v1721_v40, %v1649_v42 }
 0x151   : > { %v474_v41 = vpop.f32.mrf.mxu0 }
 0x152   : > { %v475_v44 = vadd.f32 %v1649_v42, %v474_v41  ;;  %v539_v53 = vmax.f32 %v483_v46, 0.0 }
 0x153   : > { %v1722_v43 = vpop.f32.mrf.mxu0 }
 0x154   : > { %v486_v45 = vadd.f32 %v1722_v43, %v1649_v42  ;;  %v537_v51 = vmax.f32 %v475_v44, 0.0 }
 0x155   : > { %v477_v47 = vpop.f32.mrf.mxu0 }
 0x156   : > { %v478_v48 = vadd.f32 %v1649_v42, %v477_v47  ;;  %v540_v49 = vmax.f32 %v486_v45, 0.0  ;;  %v1040_v47 = vld [vmem:[%s2315_s13 + $0x18] sm:$0xff] }
 0x157   : > { %v1725_v50 = vpop.f32.mrf.mxu0 }
 0x158   : > { %v538_v52 = vmax.f32 %v478_v48, 0.0  ;;  %v554_v56 = vpack.c.bf16 %v540_v49, %v539_v53  ;;  %v499_v60 = vadd.f32 %v1725_v50, %v1649_v42 }
 0x159   : > { %v490_v54 = vpop.f32.mrf.mxu0 }
 0x15a   : > { %v553_v55 = vpack.c.bf16 %v538_v52, %v537_v51  ;;  %v491_v58 = vadd.f32 %v1649_v42, %v490_v54  ;;  %v543_v3 = vmax.f32 %v499_v60, 0.0  ;;  %v1038_v52 = vld [vmem:[%s2315_s13 + $0x8] sm:$0xff] }
 0x15b   : > { %v1726_v57 = vpop.f32.mrf.mxu0 }
 0x15c   : > { %v502_v59 = vadd.f32 %v1726_v57, %v1649_v42  ;;  %1751 = vmatprep.mubr.bf16.mxu1 %v553_v55  ;;  %v541_v1 = vmax.f32 %v491_v58, 0.0 }
 0x15d   : > { %v493_v61 = vpop.f32.mrf.mxu0  ;;  %1752 = vmatmul.mubr.bf16.vlgmr.msra.gmra.mxu1 %v554_v56 }
 0x15e   : > { %v494_v62 = vadd.f32 %v1649_v42, %v493_v61  ;;  %v544_v63 = vmax.f32 %v502_v59, 0.0  ;;  %v1043_v61 = vld [vmem:[%s2315_s13 + $0x30] sm:$0xff] }
 0x15f   : > { %v1729_v0 = vpop.f32.mrf.mxu0 }
 0x160   : > { %v542_v2 = vmax.f32 %v494_v62, 0.0  ;;  %v556_v6 = vpack.c.bf16 %v544_v63, %v543_v3  ;;  %v515_v10 = vadd.f32 %v1729_v0, %v1649_v42  ;;  %v1044_v0 = vld [vmem:[%s2315_s13 + $0x38] sm:$0xff] }
 0x161   : > { %v506_v4 = vpop.f32.mrf.mxu0 }
 0x162   : > { %v555_v5 = vpack.c.bf16 %v542_v2, %v541_v1  ;;  %v507_v8 = vadd.f32 %v1649_v42, %v506_v4  ;;  %v547_v17 = vmax.f32 %v515_v10, 0.0 }
 0x163   : > { %v1730_v7 = vpop.f32.mrf.mxu0 }
 0x164   : > { %v518_v9 = vadd.f32 %v1730_v7, %v1649_v42  ;;  %1755 = vmatprep.mubr.bf16.mxu1 %v555_v5  ;;  %v545_v15 = vmax.f32 %v507_v8, 0.0 }
 0x165   : > { %v509_v11 = vpop.f32.mrf.mxu0  ;;  %1756 = vmatmul.mubr.bf16.gmra.mxu1 %v556_v6  ;;  %v1041_v6 = vld [vmem:[%s2315_s13 + $0x20] sm:$0xff] }
 0x166   : > { %v510_v12 = vadd.f32 %v1649_v42, %v509_v11  ;;  %v548_v13 = vmax.f32 %v518_v9, 0.0 }
 0x167   : > { %v1733_v14 = vpop.f32.mrf.mxu0 }
 0x168   : > { %v546_v16 = vmax.f32 %v510_v12, 0.0  ;;  %v558_v20 = vpack.c.bf16 %v548_v13, %v547_v17  ;;  %v531_v24 = vadd.f32 %v1733_v14, %v1649_v42  ;;  %v1042_v12 = vld [vmem:[%s2315_s13 + $0x28] sm:$0xff]  ;;  %v1047_v17 = vld [vmem:[%s2315_s13 + $0x50] sm:$0xff] }
 0x169   : > { %v522_v18 = vpop.f32.mrf.mxu0 }
 0x16a   : > { %v557_v19 = vpack.c.bf16 %v546_v16, %v545_v15  ;;  %v523_v22 = vadd.f32 %v1649_v42, %v522_v18  ;;  %v551_v30 = vmax.f32 %v531_v24, 0.0 }
 0x16b   : > { %v1734_v21 = vpop.f32.mrf.mxu0 }
 0x16c   : > { %v534_v23 = vadd.f32 %v1734_v21, %v1649_v42  ;;  %1759 = vmatprep.mubr.bf16.mxu1 %v557_v19  ;;  %v549_v28 = vmax.f32 %v523_v22, 0.0  ;;  %v1048_v22 = vld [vmem:[%s2315_s13 + $0x58] sm:$0xff] }
 0x16d   : > { %v525_v25 = vpop.f32.mrf.mxu0  ;;  %1760 = vmatmul.mubr.bf16.gmra.mxu1 %v558_v20 }
 0x16e   : > { %v526_v26 = vadd.f32 %v1649_v42, %v525_v25  ;;  %v552_v27 = vmax.f32 %v534_v23, 0.0  ;;  %v1037_v42 = vld [vmem:[%s2315_s13] sm:$0xff] }
 0x170   : > { %v550_v29 = vmax.f32 %v526_v26, 0.0  ;;  %v560_v32 = vpack.c.bf16 %v552_v27, %v551_v30 }
 0x172   : > { %v559_v31 = vpack.c.bf16 %v550_v29, %v549_v28  ;;  %v1045_v29 = vld [vmem:[%s2315_s13 + $0x40] sm:$0xff] }
 0x174   : > { %1763 = vmatprep.mubr.bf16.mxu1 %v559_v31 }
 0x175   : > { %1764 = vmatmul.mubr.bf16.gmra.mxu1 %v560_v32 }
 0x21d   : > { %v1753_v36 = vpop.f32.mrf.mxu1 }
 0x21e   : > { %v2357_v37 = vadd.f32 %v1753_v36, %v2353_v35 }
 0x21f   : > { %v666_v39 = vpop.f32.mrf.mxu1 }
 0x220   : > { %v2363_v40 = vsel %vm731_vm0, %v2357_v37, -1e+30  ;;  %v2366_v41 = vadd.f32 %v2353_v35, %v666_v39 }
 0x221   : > { %v1754_v43 = vpop.f32.mrf.mxu1  ;;  %v2370_v44 = vadd.f32 %v1039_v38, %v2363_v40  ;;  %v1046_v38 = vld [vmem:[%s2315_s13 + $0x48] sm:$0xff] }
 0x222   : > { %v2375_v45 = vsel %vm731_vm0, %v2366_v41, -1e+30  ;;  %v2378_v46 = vadd.f32 %v1754_v43, %v2353_v35 }
 0x223   : > { %1073 = vmax.xlane.f32.xlu1 %v2370_v44  ;;  %v669_v48 = vpop.f32.mrf.mxu1  ;;  %v2383_v49 = vadd.f32 %v1037_v42, %v2375_v45 }
 0x224   : > { %v2388_v50 = vsel %vm731_vm0, %v2378_v46, -1e+30  ;;  %v2391_v51 = vadd.f32 %v2353_v35, %v669_v48 }
 0x225   : > { %v1757_v53 = vpop.f32.mrf.mxu1  ;;  %1069 = vmax.xlane.f32.xlu0 %v2383_v49  ;;  %v2396_v54 = vadd.f32 %v1040_v47, %v2388_v50 }
 0x226   : > { %v2401_v55 = vsel %vm731_vm0, %v2391_v51, -1e+30  ;;  %v2404_v56 = vadd.f32 %v1757_v53, %v2353_v35 }
 0x227   : > { %1075 = vmax.xlane.f32.xlu1 %v2396_v54  ;;  %v682_v57 = vpop.f32.mrf.mxu1  ;;  %v2408_v58 = vadd.f32 %v1038_v52, %v2401_v55  ;;  %v1051_v52 = vld [vmem:[%s2315_s13 + $0x70] sm:$0xff] }
 0x228   : > { %v2413_v59 = vsel %vm731_vm0, %v2404_v56, -1e+30  ;;  %v2416_v60 = vadd.f32 %v2353_v35, %v682_v57 }
 0x229   : > { %v1758_v62 = vpop.f32.mrf.mxu1  ;;  %1071 = vmax.xlane.f32.xlu0 %v2408_v58  ;;  %v2423_v2 = vadd.f32 %v1043_v61, %v2413_v59 }
 0x22a   : > { %v694_v63 = vadd.f32 %v1758_v62, %v2353_v35  ;;  %v2429_v3 = vsel %vm731_vm0, %v2416_v60, -1e+30 }
 0x22b   : > { %v685_v1 = vpop.f32.mrf.mxu1  ;;  %v2456_v14 = vadd.f32 %v1041_v6, %v2429_v3 }
 0x22c   : > { %v2433_v4 = vsel %vm731_vm0, %v694_v63, -1e+30  ;;  %v2436_v5 = vadd.f32 %v2353_v35, %v685_v1  ;;  %v2441_v7 = vsel %vm732_vm1, %v694_v63, 0.0  ;;  %v1052_v63 = vld [vmem:[%s2315_s13 + $0x78] sm:$0xff] }
 0x22d   : > { %v1761_v8 = vpop.f32.mrf.mxu1  ;;  %1081 = vmax.xlane.f32.xlu0 %v2423_v2  ;;  %v2445_v9 = vadd.f32 %v1044_v0, %v2433_v4 }
 0x22e   : > { %v2450_v10 = vsel %vm731_vm0, %v2436_v5, -1e+30  ;;  %v707_v11 = vadd.f32 %v1761_v8, %v2353_v35 }
 0x22f   : > { %1083 = vmax.xlane.f32.xlu1 %v2445_v9  ;;  %v698_v13 = vpop.f32.mrf.mxu1  ;;  %v2470_v20 = vadd.f32 %v1042_v12, %v2450_v10 }
 0x230   : > { %v2460_v15 = vsel %vm731_vm0, %v707_v11, -1e+30  ;;  %v699_v16 = vadd.f32 %v2353_v35, %v698_v13  ;;  %v2466_v18 = vsel %vm732_vm1, %v707_v11, 0.0  ;;  %v1049_v13 = vld [vmem:[%s2315_s13 + $0x60] sm:$0xff] }
 0x231   : > { %v1762_v19 = vpop.f32.mrf.mxu1  ;;  %1077 = vmax.xlane.f32.xlu0 %v2456_v14  ;;  %v2480_v25 = vadd.f32 %v1047_v17, %v2460_v15 }
 0x232   : > { %v710_v21 = vadd.f32 %v1762_v19, %v2353_v35  ;;  %v2476_v23 = vsel %vm732_vm1, %v699_v16, 0.0  ;;  %v2484_v26 = vsel %vm731_vm0, %v699_v16, -1e+30 }
 0x233   : > { %v701_v24 = vpop.f32.mrf.mxu1  ;;  %1079 = vmax.xlane.f32.xlu1 %v2470_v20  ;;  %v2512_v43 = vadd.f32 %v1045_v29, %v2484_v26  ;;  %v734_v29 = vsel %vm732_vm1, %v2391_v51, 0.0  ;;  %v738_v51 = vsel %vm732_vm1, %v2436_v5, 0.0 }
 0x234   : > { %v2488_v27 = vsel %vm731_vm0, %v710_v21, -1e+30  ;;  %v702_v28 = vadd.f32 %v2353_v35, %v701_v24  ;;  %v2494_v30 = vsel %vm732_vm1, %v710_v21, 0.0  ;;  %v1050_v21 = vld [vmem:[%s2315_s13 + $0x68] sm:$0xff] }
 0x235   : > { %v1765_v31 = vpop.f32.mrf.mxu1  ;;  %1089 = vmax.xlane.f32.xlu0 %v2480_v25  ;;  %v2498_v32 = vadd.f32 %v1048_v22, %v2488_v27 }
 0x236   : > { %v2502_v33 = vsel %vm731_vm0, %v702_v28, -1e+30  ;;  %v723_v36 = vadd.f32 %v1765_v31, %v2353_v35  ;;  %v2508_v39 = vsel %vm732_vm1, %v702_v28, 0.0  ;;  %v733_v28 = vsel %vm732_vm1, %v2366_v41, 0.0 }
 0x237   : > { %v714_v42 = vpop.f32.mrf.mxu1  ;;  %1091 = vmax.xlane.f32.xlu1 %v2498_v32  ;;  %v2526_v61 = vadd.f32 %v1046_v38, %v2502_v33  ;;  %v735_v31 = vsel %vm732_vm1, %v2357_v37, 0.0  ;;  %v737_v41 = vsel %vm732_vm1, %v2416_v60, 0.0  ;;  %v739_v37 = vsel %vm732_vm1, %v2404_v56, 0.0 }
 0x238   : > { %v2516_v47 = vsel %vm731_vm0, %v723_v36, -1e+30  ;;  %v715_v48 = vadd.f32 %v2353_v35, %v714_v42  ;;  %v2522_v53 = vsel %vm732_vm1, %v723_v36, 0.0  ;;  %v736_v36 = vsel %vm732_vm1, %v2378_v46, 0.0 }
 0x239   : > { %v1766_v57 = vpop.f32.mrf.mxu1  ;;  %1085 = vmax.xlane.f32.xlu0 %v2512_v43  ;;  %v2536_v6 = vadd.f32 %v1051_v52, %v2516_v47 }
 0x23a   : > { %v726_v62 = vadd.f32 %v1766_v57, %v2353_v35  ;;  %v2532_v0 = vsel %vm732_vm1, %v715_v48, 0.0  ;;  %v2540_v8 = vsel %vm731_vm0, %v715_v48, -1e+30 }
 0x23b   : > { %v717_v1 = vpop.f32.mrf.mxu1  ;;  %1087 = vmax.xlane.f32.xlu1 %v2526_v61 }
 0x23c   : > { %v2544_v11 = vsel %vm731_vm0, %v726_v62, -1e+30  ;;  %v718_v12 = vadd.f32 %v2353_v35, %v717_v1  ;;  %v2550_v16 = vsel %vm732_vm1, %v726_v62, 0.0  ;;  %v2567_v35 = vadd.f32 %v1049_v13, %v2540_v8 }
 0x23d   : > { %1097 = vmax.xlane.f32.xlu0 %v2536_v6  ;;  %v2554_v17 = vadd.f32 %v1052_v63, %v2544_v11 }
 0x23e   : > { %v2558_v19 = vsel %vm731_vm0, %v718_v12, -1e+30  ;;  %v2563_v22 = vsel %vm732_vm1, %v718_v12, 0.0 }
 0x23f   : > { %1099 = vmax.xlane.f32.xlu1 %v2554_v17  ;;  %v2571_v24 = vadd.f32 %v1050_v21, %v2558_v19 }
 0x241   : > { %1093 = vmax.xlane.f32.xlu0 %v2567_v35 }
 0x243   : > { %1095 = vmax.xlane.f32.xlu1 %v2571_v24 }
 0x245   : > { %749 = vadd.xlane.f32.xlu0 %v733_v28 }
 0x247   : > { %751 = vadd.xlane.f32.xlu1 %v734_v29 }
 0x249   : > { %753 = vadd.xlane.f32.xlu0 %v735_v31 }
 0x24b   : > { %755 = vadd.xlane.f32.xlu1 %v736_v36 }
 0x24d   : > { %757 = vadd.xlane.f32.xlu0 %v737_v41 }
 0x24f   : > { %759 = vadd.xlane.f32.xlu1 %v738_v51 }
 0x251   : > { %761 = vadd.xlane.f32.xlu0 %v739_v37 }
 0x253   : > { %797 = vmax.xlane.f32.xlu1 %v2375_v45 }
 0x255   : > { %799 = vmax.xlane.f32.xlu0 %v2401_v55 }
 0x257   : > { %801 = vmax.xlane.f32.xlu1 %v2363_v40 }
 0x259   : > { %803 = vmax.xlane.f32.xlu0 %v2388_v50 }
 0x25b   : > { %805 = vmax.xlane.f32.xlu1 %v2429_v3 }
 0x25d   : > { %807 = vmax.xlane.f32.xlu0 %v2450_v10 }
 0x25f   : > { %809 = vmax.xlane.f32.xlu1 %v2413_v59 }
 0x261   : > { %811 = vmax.xlane.f32.xlu0 %v2433_v4 }
 0x263   : > { %813 = vmax.xlane.f32.xlu1 %v2484_v26 }
 0x265   : > { %815 = vmax.xlane.f32.xlu0 %v2502_v33 }
 0x267   : > { %817 = vmax.xlane.f32.xlu1 %v2460_v15 }
 0x269   : > { %819 = vmax.xlane.f32.xlu0 %v2488_v27 }
 0x26b   : > { %821 = vmax.xlane.f32.xlu1 %v2540_v8 }
 0x26d   : > { %823 = vmax.xlane.f32.xlu0 %v2558_v19 }
 0x26f   : > { %825 = vmax.xlane.f32.xlu1 %v2516_v47 }
 0x2ac   : > { %v1074_v46 = vpop.xlane.xlu1 %1073 }
 0x2ad   : > { %vm1103_vm2 = vcmp.eq.f32.partialorder %v2370_v44, %v1074_v46 }
 0x2ae   : > { %v2612_v56 = vsel %vm1103_vm2, %v2348_v34, 128  ;;  %v1070_v60 = vpop.xlane.xlu0 %1069 }
 0x2af   : > { %vm1101_vm3 = vcmp.eq.f32.partialorder %v2383_v49, %v1070_v60  ;;  %v1162_v5 = vshra.s32 %v2612_v56, 16 }
 0x2b0   : > { %v2617_v38 = vsel %vm1101_vm3, %v2348_v34, 128  ;;  %v1076_v42 = vpop.xlane.xlu1 %1075 }
 0x2b1   : > { %vm1104_vm4 = vcmp.eq.f32.partialorder %v2396_v54, %v1076_v42  ;;  %v2620_v48 = vcvt.s32.f32 %v1162_v5  ;;  %v1134_v52 = vshra.s32 %v2617_v38, 16 }
 0x2b2   : > { %v2624_v44 = vsel %vm1104_vm4, %v2348_v34, 128  ;;  %v1072_v57 = vpop.xlane.xlu0 %1071 }
 0x2b3   : > { %vm1102_vm5 = vcmp.eq.f32.partialorder %v2408_v58, %v1072_v57  ;;  %1165 = vmin.xlane.f32.xlu1 %v2620_v48  ;;  %v1176_v49 = vshra.s32 %v2624_v44, 16  ;;  %v2632_v63 = vcvt.s32.f32 %v1134_v52 }
 0x2b4   : > { %v2630_v62 = vsel %vm1102_vm5, %v2348_v34, 128 }
 0x2b5   : > { %v2634_v54 = vcvt.s32.f32 %v1176_v49  ;;  %v1148_v1 = vshra.s32 %v2630_v62, 16 }
 0x2b6   : > { %v1082_v12 = vpop.xlane.xlu0 %1081 }
 0x2b7   : > { %vm1107_vm6 = vcmp.eq.f32.partialorder %v2423_v2, %v1082_v12  ;;  %1137 = vmin.xlane.f32.xlu1 %v2632_v63  ;;  %1179 = vmin.xlane.f32.xlu0 %v2634_v54  ;;  %v2644_v21 = vcvt.s32.f32 %v1148_v1 }
 0x2b8   : > { %v2641_v58 = vsel %vm1107_vm6, %v2348_v34, 128  ;;  %v1084_v13 = vpop.xlane.xlu1 %1083 }
 0x2b9   : > { %vm1108_vm7 = vcmp.eq.f32.partialorder %v2445_v9, %v1084_v13  ;;  %v1218_v28 = vshra.s32 %v2641_v58, 16 }
 0x2ba   : > { %v2648_v29 = vsel %vm1108_vm7, %v2348_v34, 128  ;;  %v1078_v31 = vpop.xlane.xlu0 %1077 }
 0x2bb   : > { %vm1105_vm8 = vcmp.eq.f32.partialorder %v2456_v14, %v1078_v31  ;;  %1151 = vmin.xlane.f32.xlu0 %v2644_v21  ;;  %v2652_v2 = vcvt.s32.f32 %v1218_v28  ;;  %v1232_v36 = vshra.s32 %v2648_v29, 16 }
 0x2bc   : > { %v2656_v41 = vsel %vm1105_vm8, %v2348_v34, 128  ;;  %v1080_v9 = vpop.xlane.xlu1 %1079 }
 0x2bd   : > { %vm1106_vm9 = vcmp.eq.f32.partialorder %v2470_v20, %v1080_v9  ;;  %1221 = vmin.xlane.f32.xlu1 %v2652_v2  ;;  %v2660_v51 = vcvt.s32.f32 %v1232_v36  ;;  %v1190_v37 = vshra.s32 %v2656_v41, 16 }
 0x2be   : > { %v2664_v14 = vsel %vm1106_vm9, %v2348_v34, 128  ;;  %v1090_v46 = vpop.xlane.xlu0 %1089 }
 0x2bf   : > { %vm1111_vm10 = vcmp.eq.f32.partialorder %v2480_v25, %v1090_v46  ;;  %1235 = vmin.xlane.f32.xlu0 %v2660_v51  ;;  %v2668_v60 = vcvt.s32.f32 %v1190_v37  ;;  %v1204_v5 = vshra.s32 %v2664_v14, 16 }
 0x2c0   : > { %v2672_v20 = vsel %vm1111_vm10, %v2348_v34, 128  ;;  %v1092_v42 = vpop.xlane.xlu1 %1091 }
 0x2c1   : > { %vm1112_vm11 = vcmp.eq.f32.partialorder %v2498_v32, %v1092_v42  ;;  %1193 = vmin.xlane.f32.xlu1 %v2668_v60  ;;  %v2676_v52 = vcvt.s32.f32 %v1204_v5  ;;  %v1274_v57 = vshra.s32 %v2672_v20, 16 }
 0x2c2   : > { %v2680_v25 = vsel %vm1112_vm11, %v2348_v34, 128  ;;  %v1086_v49 = vpop.xlane.xlu0 %1085 }
 0x2c3   : > { %vm1109_vm12 = vcmp.eq.f32.partialorder %v2512_v43, %v1086_v49  ;;  %1207 = vmin.xlane.f32.xlu0 %v2676_v52  ;;  %v2684_v1 = vcvt.s32.f32 %v1274_v57  ;;  %v1288_v12 = vshra.s32 %v2680_v25, 16 }
 0x2c4   : > { %v2688_v32 = vsel %vm1109_vm12, %v2348_v34, 128  ;;  %v1088_v13 = vpop.xlane.xlu1 %1087 }
 0x2c5   : > { %vm1110_vm13 = vcmp.eq.f32.partialorder %v2526_v61, %v1088_v13  ;;  %1277 = vmin.xlane.f32.xlu1 %v2684_v1  ;;  %v2692_v28 = vcvt.s32.f32 %v1288_v12  ;;  %v1246_v31 = vshra.s32 %v2688_v32, 16 }
 0x2c6   : > { %v2696_v43 = vsel %vm1110_vm13, %v2348_v34, 128  ;;  %v1098_v36 = vpop.xlane.xlu0 %1097 }
 0x2c7   : > { %vm1115_vm14 = vcmp.eq.f32.partialorder %v2536_v6, %v1098_v36  ;;  %1291 = vmin.xlane.f32.xlu0 %v2692_v28  ;;  %v2700_v9 = vcvt.s32.f32 %v1246_v31  ;;  %v1260_v37 = vshra.s32 %v2696_v43, 16 }
 0x2c8   : > { %v2704_v61 = vsel %vm1115_vm14, %v2348_v34, 128  ;;  %v1100_v46 = vpop.xlane.xlu1 %1099 }
 0x2c9   : > { %vm1116_vm15 = vcmp.eq.f32.partialorder %v2554_v17, %v1100_v46  ;;  %1249 = vmin.xlane.f32.xlu1 %v2700_v9  ;;  %v2708_v5 = vcvt.s32.f32 %v1260_v37  ;;  %v1330_v42 = vshra.s32 %v2704_v61, 16 }
 0x2ca   : > { %v2712_v6 = vsel %vm1116_vm15, %v2348_v34, 128  ;;  %v1094_v57 = vpop.xlane.xlu0 %1093 }
 0x2cb   : > { %vm1113_vm0 = vcmp.eq.f32.partialorder %v2567_v35, %v1094_v57  ;;  %1263 = vmin.xlane.f32.xlu0 %v2708_v5  ;;  %v2716_v49 = vcvt.s32.f32 %v1330_v42  ;;  %v1344_v12 = vshra.s32 %v2712_v6, 16 }
 0x2cc   : > { %v2720_v17 = vsel %vm1113_vm0, %v2348_v34, 128  ;;  %v1096_v13 = vpop.xlane.xlu1 %1095 }
 0x2cd   : > { %vm1114_vm1 = vcmp.eq.f32.partialorder %v2571_v24, %v1096_v13  ;;  %1333 = vmin.xlane.f32.xlu1 %v2716_v49  ;;  %v2724_v31 = vcvt.s32.f32 %v1344_v12  ;;  %v1302_v36 = vshra.s32 %v2720_v17, 16 }
 0x2ce   : > { %v2728_v35 = vsel %vm1114_vm1, %v2348_v34, 128  ;;  %v2730_v37 = vpop.xlane.xlu0 %749 }
 0x2cf   : > { %3418 = vst [vmem:[#allocation14_spill] sm:$0xff] %v2730_v37  ;;  %1347 = vmin.xlane.f32.xlu0 %v2724_v31  ;;  %v2733_v46 = vcvt.s32.f32 %v1302_v36  ;;  %v1316_v42 = vshra.s32 %v2728_v35, 16 }
 0x2d0   : > { %v2736_v57 = vpop.xlane.xlu1 %751 }
 0x2d1   : > { %3419 = vst [vmem:[#allocation15_spill] sm:$0xff] %v2736_v57  ;;  %1305 = vmin.xlane.f32.xlu1 %v2733_v46  ;;  %v2739_v24 = vcvt.s32.f32 %v1316_v42 }
 0x2d2   : > { %v2741_v12 = vpop.xlane.xlu0 %753 }
 0x2d3   : > { %3420 = vst [vmem:[#allocation16_spill] sm:$0xff] %v2741_v12  ;;  %1319 = vmin.xlane.f32.xlu0 %v2739_v24 }
 0x2d4   : > { %v2744_v13 = vpop.xlane.xlu1 %755 }
 0x2d5   : > { %3421 = vst [vmem:[#allocation17_spill] sm:$0xff] %v2744_v13  ;;  %763 = vadd.xlane.f32.xlu1 %v2441_v7 }
 0x2d6   : > { %v2747_v37 = vpop.xlane.xlu0 %757 }
 0x2d7   : > { %3422 = vst [vmem:[#allocation18_spill] sm:$0xff] %v2747_v37  ;;  %827 = vmax.xlane.f32.xlu0 %v2544_v11 }
 0x2d8   : > { %v2750_v36 = vpop.xlane.xlu1 %759 }
 0x2d9   : > { %3423 = vst [vmem:[#allocation19_spill] sm:$0xff] %v2750_v36  ;;  %767 = vadd.xlane.f32.xlu1 %v2508_v39 }
 0x2da   : > { %v2753_v57 = vpop.xlane.xlu0 %761 }
 0x2db   : > { %3424 = vst [vmem:[#allocation20_spill] sm:$0xff] %v2753_v57  ;;  %765 = vadd.xlane.f32.xlu0 %v2476_v23  ;;  %v1161_v57 = vand.u32 65535, %v2612_v56  ;;  %v1147_v56 = vand.u32 65535, %v2630_v62 }
 0x2dc   : > { %v798_v42 = vpop.xlane.xlu1 %797 }
 0x2dd   : > { %v2757_v12 = vsub.f32 %v2375_v45, %v798_v42  ;;  %771 = vadd.xlane.f32.xlu1 %v2494_v30 }
 0x2de   : > { %v800_v13 = vpop.xlane.xlu0 %799 }
 0x2df   : > { %v845_v7 = vmul.f32 1.442695, %v2757_v12  ;;  %v2762_v37 = vsub.f32 %v2401_v55, %v800_v13  ;;  %769 = vadd.xlane.f32.xlu0 %v2466_v18 }
 0x2e0   : > { %v802_v36 = vpop.xlane.xlu1 %801 }
 0x2e1   : > { %1852 = vpow2.f32 %v845_v7  ;;  %v847_v39 = vmul.f32 1.442695, %v2762_v37  ;;  %v2767_v23 = vsub.f32 %v2363_v40, %v802_v36  ;;  %775 = vadd.xlane.f32.xlu1 %v2563_v22 }
 0x2e2   : > { %v804_v45 = vpop.xlane.xlu0 %803 }
 0x2e3   : > { %1854 = vpow2.f32 %v847_v39  ;;  %v849_v30 = vmul.f32 1.442695, %v2767_v23  ;;  %v2772_v42 = vsub.f32 %v2388_v50, %v804_v45  ;;  %773 = vadd.xlane.f32.xlu0 %v2532_v0 }
 0x2e4   : > { %v806_v55 = vpop.xlane.xlu1 %805 }
 0x2e5   : > { %1856 = vpow2.f32 %v849_v30  ;;  %v851_v18 = vmul.f32 1.442695, %v2772_v42  ;;  %v2777_v13 = vsub.f32 %v2429_v3, %v806_v55  ;;  %779 = vadd.xlane.f32.xlu1 %v2550_v16 }
 0x2e6   : > { %v808_v40 = vpop.xlane.xlu0 %807 }
 0x2e7   : > { %1858 = vpow2.f32 %v851_v18  ;;  %v853_v22 = vmul.f32 1.442695, %v2777_v13  ;;  %v2782_v36 = vsub.f32 %v2450_v10, %v808_v40  ;;  %777 = vadd.xlane.f32.xlu0 %v2522_v53 }
 0x2e8   : > { %v810_v50 = vpop.xlane.xlu1 %809 }
 0x2e9   : > { %3425 = vst [vmem:[#allocation21_spill] sm:$0xff] %v2782_v36  ;;  %1860 = vpow2.f32 %v853_v22  ;;  %v855_v0 = vmul.f32 1.442695, %v2782_v36  ;;  %v2787_v7 = vsub.f32 %v2413_v59, %v810_v50 }
 0x2ea   : > { %v812_v3 = vpop.xlane.xlu0 %811 }
 0x2eb   : > { %1862 = vpow2.f32 %v855_v0  ;;  %v857_v16 = vmul.f32 1.442695, %v2787_v7  ;;  %v2791_v39 = vsub.f32 %v2433_v4, %v812_v3 }
 0x2ec   : > { %v814_v45 = vpop.xlane.xlu1 %813 }
 0x2ed   : > { %3426 = vst [vmem:[#allocation22_spill] sm:$0xff] %v2791_v39  ;;  %1864 = vpow2.f32 %v857_v16  ;;  %v859_v10 = vmul.f32 1.442695, %v2791_v39  ;;  %v2795_v53 = vsub.f32 %v2484_v26, %v814_v45  ;;  %v1133_v39 = vand.u32 65535, %v2617_v38 }
 0x2ee   : > { %v2797_v30 = vpop.eup %1852  ;;  %v816_v55 = vpop.xlane.xlu0 %815 }
 0x2ef   : > { %3427 = vst [vmem:[#allocation23_spill] sm:$0xff] %v2795_v53  ;;  %1866 = vpow2.f32 %v859_v10  ;;  %v861_v59 = vmul.f32 1.442695, %v2795_v53  ;;  %v2801_v18 = vsub.f32 %v2502_v33, %v816_v55  ;;  %877 = vadd.xlane.f32.xlu0 %v2797_v30  ;;  %v1135_v53 = vcvt.s32.f32 %v1133_v39 }
 0x2f0   : > { %v2804_v4 = vpop.eup %1854  ;;  %v818_v10 = vpop.xlane.xlu1 %817  ;;  %v1231_v39 = vand.u32 65535, %v2648_v29 }
 0x2f1   : > { %3428 = vst [vmem:[#allocation24_spill] sm:$0xff] %v2801_v18  ;;  %1868 = vpow2.f32 %v861_v59  ;;  %v863_v40 = vmul.f32 1.442695, %v2801_v18  ;;  %879 = vadd.xlane.f32.xlu1 %v2804_v4 }
 0x2f2   : > { %v2808_v26 = vpop.eup %1856  ;;  %v820_v59 = vpop.xlane.xlu0 %819 }
 0x2f3   : > { %1870 = vpow2.f32 %v863_v40  ;;  %881 = vadd.xlane.f32.xlu0 %v2808_v26 }
 0x2f4   : > { %v2811_v22 = vpop.eup %1858  ;;  %v2832_v55 = vpop.xlane.xlu1 %821 }
 0x2f5   : > { %3429 = vst [vmem:[#allocation25_spill] sm:$0xff] %v2811_v22  ;;  %883 = vadd.xlane.f32.xlu1 %v2811_v22 }
 0x2f6   : > { %v2814_v33 = vpop.eup %1860  ;;  %v824_v34 = vpop.xlane.xlu0 %823 }
 0x2f7   : > { %885 = vadd.xlane.f32.xlu0 %v2814_v33 }
 0x2f8   : > { %v2817_v50 = vpop.eup %1862  ;;  %v2834_v40 = vpop.xlane.xlu1 %825 }
 0x2f9   : > { %3430 = vst [vmem:[#allocation26_spill] sm:$0xff] %v2817_v50  ;;  %887 = vadd.xlane.f32.xlu1 %v2817_v50  ;;  %v1175_v50 = vand.u32 65535, %v2624_v44 }
 0x2fa   : > { %v2820_v0 = vpop.eup %1864 }
 0x2fb   : > { %889 = vadd.xlane.f32.xlu0 %v2820_v0  ;;  %v1177_v22 = vcvt.s32.f32 %v1175_v50 }
 0x2fc   : > { %v2823_v3 = vpop.eup %1866 }
 0x2fd   : > { %3431 = vst [vmem:[#allocation27_spill] sm:$0xff] %v2823_v3  ;;  %891 = vadd.xlane.f32.xlu1 %v2823_v3  ;;  %v1163_v3 = vcvt.s32.f32 %v1161_v57 }
 0x2fe   : > { %v2826_v16 = vpop.eup %1868 }
 0x2ff   : > { %3432 = vst [vmem:[#allocation28_spill] sm:$0xff] %v2826_v16  ;;  %893 = vadd.xlane.f32.xlu0 %v2826_v16 }
 0x300   : > { %v2829_v45 = vpop.eup %1870 }
 0x301   : > { %3433 = vst [vmem:[#allocation29_spill] sm:$0xff] %v2829_v45  ;;  %895 = vadd.xlane.f32.xlu1 %v2829_v45 }
 0x33c   : > { %v2837_v18 = vpop.xlane.xlu1 %1165 }
 0x33d   : > { %vm1167_vm2 = vcmp.eq.f32.partialorder %v2620_v48, %v2837_v18  ;;  %v1217_v48 = vand.u32 65535, %v2641_v58 }
 0x33e   : > { %v1168_v45 = vsel %vm1167_vm2, %v1163_v3, inf  ;;  %v1149_v3 = vcvt.s32.f32 %v1147_v56 }
 0x33f   : > { %1169 = vmin.xlane.f32.xlu1 %v1168_v45  ;;  %v1219_v50 = vcvt.s32.f32 %v1217_v48  ;;  %v1203_v45 = vand.u32 65535, %v2664_v14  ;;  %v1287_v48 = vand.u32 65535, %v2680_v25 }
 0x340   : > { %v2843_v36 = vpop.xlane.xlu1 %1137  ;;  %v2845_v16 = vpop.xlane.xlu0 %1179 }
 0x341   : > { %vm1139_vm3 = vcmp.eq.f32.partialorder %v2632_v63, %v2843_v36  ;;  %vm1181_vm4 = vcmp.eq.f32.partialorder %v2634_v54, %v2845_v16  ;;  %v1189_v54 = vand.u32 65535, %v2656_v41  ;;  %v1273_v41 = vand.u32 65535, %v2672_v20 }
 0x342   : > { %v1140_v38 = vsel %vm1139_vm3, %v1135_v53, inf  ;;  %v1182_v44 = vsel %vm1181_vm4, %v1177_v22, inf  ;;  %v1233_v22 = vcvt.s32.f32 %v1231_v39  ;;  %v2889_v39 = vsub.f32 %v2558_v19, %v824_v34 }
 0x343   : > { %1141 = vmin.xlane.f32.xlu1 %v1140_v38  ;;  %1183 = vmin.xlane.f32.xlu0 %v1182_v44  ;;  %v1191_v56 = vcvt.s32.f32 %v1189_v54  ;;  %v2872_v38 = vsub.f32 %v2488_v27, %v820_v59  ;;  %v1205_v44 = vcvt.s32.f32 %v1203_v45  ;;  %v1275_v59 = vcvt.s32.f32 %v1273_v41 }
 0x344   : > { %v2853_v57 = vpop.xlane.xlu0 %1151  ;;  %v871_v54 = vmul.f32 1.442695, %v2889_v39 }
 0x345   : > { %vm1153_vm5 = vcmp.eq.f32.partialorder %v2644_v21, %v2853_v57 }
 0x346   : > { %v2858_v62 = vpop.xlane.xlu1 %1221  ;;  %v1154_v63 = vsel %vm1153_vm5, %v1149_v3, inf  ;;  %v1245_v3 = vand.u32 65535, %v2688_v32  ;;  %v2899_v32 = vsub.f32 %v2540_v8, %v2832_v55 }
 0x347   : > { %1155 = vmin.xlane.f32.xlu0 %v1154_v63  ;;  %vm1223_vm6 = vcmp.eq.f32.partialorder %v2652_v2, %v2858_v62 }
 0x348   : > { %v2863_v58 = vpop.xlane.xlu0 %1235  ;;  %v1224_v53 = vsel %vm1223_vm6, %v1219_v50, inf  ;;  %v1329_v50 = vand.u32 65535, %v2704_v61 }
 0x349   : > { %1225 = vmin.xlane.f32.xlu1 %v1224_v53  ;;  %vm1237_vm7 = vcmp.eq.f32.partialorder %v2660_v51, %v2863_v58  ;;  %v2880_v51 = vsub.f32 %v2460_v15, %v818_v10  ;;  %v1289_v10 = vcvt.s32.f32 %v1287_v48  ;;  %v1343_v53 = vand.u32 65535, %v2712_v6 }
 0x34a   : > { %v2868_v21 = vpop.xlane.xlu1 %1193  ;;  %v1238_v29 = vsel %vm1237_vm7, %v1233_v22, inf  ;;  %v2915_v22 = vsub.f32 %v2516_v47, %v2834_v40  ;;  %v1331_v45 = vcvt.s32.f32 %v1329_v50  ;;  %v1315_v40 = vand.u32 65535, %v2728_v35 }
 0x34b   : > { %1239 = vmin.xlane.f32.xlu0 %v1238_v29  ;;  %vm1195_vm8 = vcmp.eq.f32.partialorder %v2668_v60, %v2868_v21  ;;  %v867_v60 = vmul.f32 1.442695, %v2872_v38  ;;  %v865_v63 = vmul.f32 1.442695, %v2880_v51  ;;  %v1301_v29 = vand.u32 65535, %v2720_v17 }
 0x34c   : > { %v2876_v2 = vpop.xlane.xlu0 %1207  ;;  %v1196_v14 = vsel %vm1195_vm8, %v1191_v56, inf  ;;  %v1345_v47 = vcvt.s32.f32 %v1343_v53  ;;  %v1317_v48 = vcvt.s32.f32 %v1315_v40  ;;  %v3438_v53 = vld [vmem:[#allocation26_spill] sm:$0xff] }
 0x34d   : > { %1197 = vmin.xlane.f32.xlu1 %v1196_v14  ;;  %vm1209_vm9 = vcmp.eq.f32.partialorder %v2676_v52, %v2876_v2  ;;  %v1259_v52 = vand.u32 65535, %v2696_v43  ;;  %1872 = vpow2.f32 %v867_v60  ;;  %v1303_v14 = vcvt.s32.f32 %v1301_v29  ;;  %v3441_v29 = vld [vmem:[#allocation24_spill] sm:$0xff] }
 0x34e   : > { %v2884_v20 = vpop.xlane.xlu1 %1277  ;;  %v1210_v27 = vsel %vm1209_vm9, %v1205_v44, inf  ;;  %1874 = vpow2.f32 %v865_v63  ;;  %v961_v63 = vmul.f32 %v2814_v33, %v2777_v13  ;;  %v3439_v33 = vld [vmem:[#allocation22_spill] sm:$0xff] }
 0x34f   : > { %1211 = vmin.xlane.f32.xlu0 %v1210_v27  ;;  %vm1279_vm10 = vcmp.eq.f32.partialorder %v2684_v1, %v2884_v20  ;;  %v1247_v1 = vcvt.s32.f32 %v1245_v3  ;;  %v1261_v55 = vcvt.s32.f32 %v1259_v52  ;;  %1876 = vpow2.f32 %v871_v54  ;;  %v3436_v54 = vld [vmem:[#allocation28_spill] sm:$0xff] }
 0x350   : > { %v2893_v15 = vpop.xlane.xlu0 %1291  ;;  %v1280_v25 = vsel %vm1279_vm10, %v1275_v59, inf }
 0x351   : > { %1281 = vmin.xlane.f32.xlu1 %v1280_v25  ;;  %vm1293_vm11 = vcmp.eq.f32.partialorder %v2692_v28, %v2893_v15  ;;  %v869_v28 = vmul.f32 1.442695, %v2899_v32 }
 0x352   : > { %v2903_v34 = vpop.xlane.xlu1 %1249  ;;  %v1294_v19 = vsel %vm1293_vm11, %v1289_v10, inf }
 0x353   : > { %1295 = vmin.xlane.f32.xlu0 %v1294_v19  ;;  %vm1251_vm12 = vcmp.eq.f32.partialorder %v2700_v9, %v2903_v34  ;;  %1878 = vpow2.f32 %v869_v28  ;;  %v958_v19 = vmul.f32 %v2804_v4, %v2762_v37 }
 0x354   : > { %v2909_v43 = vpop.xlane.xlu0 %1263  ;;  %v1252_v8 = vsel %vm1251_vm12, %v1247_v1, inf  ;;  %v963_v1 = vmul.f32 %v2820_v0, %v2787_v7 }
 0x355   : > { %1253 = vmin.xlane.f32.xlu1 %v1252_v8  ;;  %vm1265_vm13 = vcmp.eq.f32.partialorder %v2708_v5, %v2909_v43  ;;  %v873_v5 = vmul.f32 1.442695, %v2915_v22 }
 0x356   : > { %v2919_v61 = vpop.xlane.xlu1 %1333  ;;  %v1266_v9 = vsel %vm1265_vm13, %v1261_v55, inf  ;;  %v3437_v55 = vld [vmem:[#allocation21_spill] sm:$0xff] }
 0x357   : > { %1267 = vmin.xlane.f32.xlu0 %v1266_v9  ;;  %vm1335_vm14 = vcmp.eq.f32.partialorder %v2716_v49, %v2919_v61  ;;  %1880 = vpow2.f32 %v873_v5  ;;  %v962_v28 = vmul.f32 %v3438_v53, %v3437_v55  ;;  %v3440_v9 = vld [vmem:[#allocation27_spill] sm:$0xff]  ;;  %v1186_v53 = vcvt.f32.s32 %v2845_v16 }
 0x358   : > { %v2924_v6 = vpop.xlane.xlu0 %1347  ;;  %v1336_v56 = vsel %vm1335_vm14, %v1331_v45, inf  ;;  %v964_v45 = vmul.f32 %v3440_v9, %v3439_v33 }
 0x359   : > { %1337 = vmin.xlane.f32.xlu1 %v1336_v56  ;;  %vm1349_vm15 = vcmp.eq.f32.partialorder %v2724_v31, %v2924_v6  ;;  %v3442_v56 = vld [vmem:[#allocation29_spill] sm:$0xff] }
 0x35a   : > { %v2930_v41 = vpop.xlane.xlu1 %1305  ;;  %v1350_v17 = vsel %vm1349_vm15, %v1345_v47, inf  ;;  %v1873_v31 = vpop.eup %1872  ;;  %v966_v47 = vmul.f32 %v3442_v56, %v3441_v29 }
 0x35b   : > { %1351 = vmin.xlane.f32.xlu0 %v1350_v17  ;;  %vm1307_vm0 = vcmp.eq.f32.partialorder %v2733_v46, %v2930_v41  ;;  %v1875_v3 = vpop.eup %1874  ;;  %v968_v5 = vmul.f32 %v1873_v31, %v2872_v38 }
 0x35c   : > { %v2934_v49 = vpop.xlane.xlu0 %1319  ;;  %v1308_v44 = vsel %vm1307_vm0, %v1303_v14, inf  ;;  %v1877_v60 = vpop.eup %1876  ;;  %v967_v4 = vmul.f32 %v1875_v3, %v2880_v51 }
 0x35d   : > { %1309 = vmin.xlane.f32.xlu1 %v1308_v44  ;;  %vm1321_vm1 = vcmp.eq.f32.partialorder %v2739_v24, %v2934_v49  ;;  %v957_v24 = vmul.f32 %v2797_v30, %v2757_v12  ;;  %v3434_v30 = vld [vmem:[#allocation25_spill] sm:$0xff]  ;;  %v970_v17 = vmul.f32 %v1877_v60, %v2889_v39 }
 0x35e   : > { %v1322_v35 = vsel %vm1321_vm1, %v1317_v48, inf  ;;  %v960_v50 = vmul.f32 %v3434_v30, %v2772_v42  ;;  %v2967_v14 = vpop.xlane.xlu1 %763 }
 0x35f   : > { %1323 = vmin.xlane.f32.xlu0 %v1322_v35 }
 0x360   : > { %v828_v27 = vpop.xlane.xlu0 %827  ;;  %v1879_v25 = vpop.eup %1878 }
 0x361   : > { %v2939_v59 = vsub.f32 %v2544_v11, %v828_v27  ;;  %899 = vadd.xlane.f32.xlu1 %v1873_v31  ;;  %v959_v11 = vmul.f32 %v2808_v26, %v2767_v23  ;;  %v3435_v26 = vld [vmem:[#allocation23_spill] sm:$0xff]  ;;  %v969_v0 = vmul.f32 %v1879_v25, %v2899_v32 }
 0x362   : > { %v965_v8 = vmul.f32 %v3436_v54, %v3435_v26  ;;  %v2970_v48 = vpop.xlane.xlu1 %767  ;;  %v1172_v54 = vcvt.f32.s32 %v2837_v18  ;;  %v3445_v18 = vld [vmem:[#allocation13_spill] sm:$0xff] }
 0x363   : > { %v875_v46 = vmul.f32 1.442695, %v2939_v59  ;;  %897 = vadd.xlane.f32.xlu0 %v1875_v3 }
 0x364   : > { %v1881_v10 = vpop.eup %1880  ;;  %v2972_v35 = vpop.xlane.xlu0 %765  ;;  %v1173_v9 = vshll.u32 %v1172_v54, 16 }
 0x365   : > { %1882 = vpow2.f32 %v875_v46  ;;  %903 = vadd.xlane.f32.xlu1 %v1877_v60  ;;  %v971_v40 = vmul.f32 %v1881_v10, %v2915_v22 }
 0x366   : > { %v2974_v27 = vpop.xlane.xlu1 %771 }
 0x367   : > { %901 = vadd.xlane.f32.xlu0 %v1879_v25 }
 0x368   : > { %v2976_v3 = vpop.xlane.xlu0 %769 }
 0x36a   : > { %v2978_v46 = vpop.xlane.xlu1 %775 }
 0x36b   : > { %905 = vadd.xlane.f32.xlu0 %v1881_v10 }
 0x36c   : > { %v2980_v31 = vpop.xlane.xlu0 %773 }
 0x36e   : > { %v2982_v25 = vpop.xlane.xlu1 %779 }
 0x36f   : > { %973 = vadd.xlane.f32.xlu0 %v957_v24  ;;  %3443 = vst [vmem:[#allocation25_spill] sm:$0xff] %v2982_v25 }
 0x370   : > { %v2984_v60 = vpop.xlane.xlu0 %777 }
 0x371   : > { %3444 = vst [vmem:[#allocation23_spill] sm:$0xff] %v2984_v60 }
 0x372   : > { %v1883_v52 = vpop.eup %1882 }
 0x373   : > { %977 = vadd.xlane.f32.xlu0 %v959_v11  ;;  %907 = vadd.xlane.f32.xlu1 %v1883_v52  ;;  %v972_v44 = vmul.f32 %v1883_v52, %v2939_v59 }
 0x377   : > { %981 = vadd.xlane.f32.xlu0 %v961_v63  ;;  %975 = vadd.xlane.f32.xlu1 %v958_v19 }
 0x378   : > { %v2988_v24 = vpop.xlane.xlu0 %877 }
 0x379   : > { %1884 = vlog2.f32 %v2988_v24 }
 0x37a   : > { %v2986_v10 = vpop.xlane.xlu1 %879 }
 0x37b   : > { %985 = vadd.xlane.f32.xlu0 %v963_v1  ;;  %979 = vadd.xlane.f32.xlu1 %v960_v50 }
 0x37c   : > { %v2992_v52 = vpop.xlane.xlu0 %881 }
 0x37d   : > { %1886 = vlog2.f32 %v2992_v52 }
 0x37e   : > { %v2990_v11 = vpop.xlane.xlu1 %883  ;;  %1888 = vrcp.f32 %v2992_v52 }
 0x37f   : > { %989 = vadd.xlane.f32.xlu0 %v965_v8  ;;  %983 = vadd.xlane.f32.xlu1 %v962_v28  ;;  %v1144_v8 = vcvt.f32.s32 %v2843_v36  ;;  %v1228_v36 = vcvt.f32.s32 %v2858_v62  ;;  %1890 = vrcp.f32 %v2988_v24 }
 0x380   : > { %v2996_v19 = vpop.xlane.xlu0 %885  ;;  %1892 = vlog2.f32 %v2986_v10 }
 0x381   : > { %v1145_v56 = vshll.u32 %v1144_v8, 16  ;;  %v1242_v8 = vcvt.f32.s32 %v2863_v58  ;;  %1894 = vlog2.f32 %v2990_v11 }
 0x382   : > { %v2994_v63 = vpop.xlane.xlu1 %887  ;;  %1896 = vrcp.f32 %v2990_v11 }
 0x383   : > { %993 = vadd.xlane.f32.xlu0 %v967_v4  ;;  %987 = vadd.xlane.f32.xlu1 %v964_v45  ;;  %1898 = vlog2.f32 %v2996_v19 }
 0x384   : > { %v3000_v30 = vpop.xlane.xlu0 %889  ;;  %1900 = vrcp.f32 %v2986_v10 }
 0x385   : > { %1902 = vrcp.f32 %v2996_v19 }
 0x386   : > { %v2998_v1 = vpop.xlane.xlu1 %891  ;;  %1904 = vlog2.f32 %v2994_v63  ;;  %v1885_v11 = vpop.eup %1884 }
 0x387   : > { %997 = vadd.xlane.f32.xlu0 %v969_v0  ;;  %991 = vadd.xlane.f32.xlu1 %v966_v47  ;;  %v1187_v47 = vshll.u32 %v1186_v53, 16  ;;  %1906 = vlog2.f32 %v3000_v30 }
 0x388   : > { %v3007_v28 = vpop.xlane.xlu0 %893  ;;  %1908 = vrcp.f32 %v3000_v30 }
 0x389   : > { %1910 = vrcp.f32 %v2994_v63 }
 0x38a   : > { %v3002_v50 = vpop.xlane.xlu1 %895  ;;  %1912 = vlog2.f32 %v2998_v1 }
 0x38b   : > { %1001 = vadd.xlane.f32.xlu0 %v971_v40  ;;  %995 = vadd.xlane.f32.xlu1 %v968_v5  ;;  %1914 = vrcp.f32 %v2998_v1 }
 0x38c   : > { %1916 = vlog2.f32 %v3007_v28 }
 0x38f   : > { %999 = vadd.xlane.f32.xlu1 %v970_v17  ;;  %v1158_v17 = vcvt.f32.s32 %v2853_v57  ;;  %v1229_v57 = vshll.u32 %v1228_v36, 16 }
 0x393   : > { %1003 = vadd.xlane.f32.xlu1 %v972_v44 }
 0x3c8   : > { %v1170_v4 = vpop.xlane.xlu1 %1169 }
 0x3c9   : > { %v1171_v45 = vcvt.f32.s32 %v1170_v4  ;;  %v1159_v4 = vshll.u32 %v1158_v17, 16 }
 0x3cb   : > { %v3009_v0 = vadd.s32 %v1173_v9, %v1171_v45 }
 0x3cc   : > { %v1142_v40 = vpop.xlane.xlu1 %1141  ;;  %v1184_v5 = vpop.xlane.xlu0 %1183 }
 0x3cd   : > { %v1143_v44 = vcvt.f32.s32 %v1142_v40  ;;  %v1185_v25 = vcvt.f32.s32 %v1184_v5  ;;  %vm1359_vm2 = vcmp.eq.s32.totalorder %v3445_v18, %v3009_v0  ;;  %v1214_v5 = vcvt.f32.s32 %v2876_v2 }
 0x3ce   : > { %v1375_v16 = vsel %vm1359_vm2, %v2767_v23, 0.0  ;;  %v1200_v23 = vcvt.f32.s32 %v2868_v21  ;;  %v1298_v2 = vcvt.f32.s32 %v2893_v15  ;;  %vm1455_vm2 = vcmp.eq.s32.totalorder %v3445_v18, 2 }
 0x3cf   : > { %v3016_v60 = vadd.s32 %v1145_v56, %v1143_v44  ;;  %v3018_v54 = vadd.s32 %v1187_v47, %v1185_v25  ;;  %1393 = vadd.xlane.f32.xlu0 %v1375_v16  ;;  %v1243_v56 = vshll.u32 %v1242_v8, 16 }
 0x3d0   : > { %v1156_v53 = vpop.xlane.xlu0 %1155  ;;  %v1201_v16 = vshll.u32 %v1200_v23, 16  ;;  %v1256_v23 = vcvt.f32.s32 %v2903_v34 }
 0x3d1   : > { %v1157_v9 = vcvt.f32.s32 %v1156_v53  ;;  %vm1357_vm3 = vcmp.eq.s32.totalorder %v3445_v18, %v3016_v60  ;;  %vm1360_vm4 = vcmp.eq.s32.totalorder %v3445_v18, %v3018_v54 }
 0x3d2   : > { %v1226_v45 = vpop.xlane.xlu1 %1225  ;;  %v1373_v40 = vsel %vm1357_vm3, %v2757_v12, 0.0  ;;  %v1376_v58 = vsel %vm1360_vm4, %v2772_v42, 0.0  ;;  %v1284_v12 = vcvt.f32.s32 %v2884_v20  ;;  %vm1454_vm3 = vcmp.eq.s32.totalorder %v3445_v18, 1 }
 0x3d3   : > { %v3027_v62 = vadd.s32 %v1159_v4, %v1157_v9  ;;  %v1227_v25 = vcvt.f32.s32 %v1226_v45  ;;  %1389 = vadd.xlane.f32.xlu0 %v1373_v40  ;;  %1395 = vadd.xlane.f32.xlu1 %v1376_v58  ;;  %v1215_v9 = vshll.u32 %v1214_v5, 16  ;;  %vm1453_vm4 = vcmp.eq.s32.totalorder %v3445_v18, 0 }
 0x3d4   : > { %v1240_v47 = vpop.xlane.xlu0 %1239 }
 0x3d5   : > { %v3031_v17 = vadd.s32 %v1229_v57, %v1227_v25  ;;  %v1241_v44 = vcvt.f32.s32 %v1240_v47  ;;  %vm1358_vm5 = vcmp.eq.s32.totalorder %v3445_v18, %v3027_v62  ;;  %v1270_v47 = vcvt.f32.s32 %v2909_v43 }
 0x3d6   : > { %v1198_v21 = vpop.xlane.xlu1 %1197  ;;  %v1374_v36 = vsel %vm1358_vm5, %v2762_v37, 0.0  ;;  %v1285_v37 = vshll.u32 %v1284_v12, 16  ;;  %v1257_v12 = vshll.u32 %v1256_v23, 16  ;;  %vm1504_vm5 = vcmask 31744  }
 0x3d7   : > { %v3037_v53 = vadd.s32 %v1243_v56, %v1241_v44  ;;  %v1199_v42 = vcvt.f32.s32 %v1198_v21  ;;  %vm1363_vm6 = vcmp.eq.s32.totalorder %v3445_v18, %v3031_v17  ;;  %1391 = vadd.xlane.f32.xlu1 %v1374_v36 }
 0x3d8   : > { %v1212_v8 = vpop.xlane.xlu0 %1211  ;;  %v1379_v4 = vsel %vm1363_vm6, %v2787_v7, 0.0  ;;  %v1299_v7 = vshll.u32 %v1298_v2, 16 }
 0x3d9   : > { %v3043_v57 = vadd.s32 %v1201_v16, %v1199_v42  ;;  %v1213_v20 = vcvt.f32.s32 %v1212_v8  ;;  %1401 = vadd.xlane.f32.xlu0 %v1379_v4  ;;  %vm1364_vm7 = vcmp.eq.s32.totalorder %v3445_v18, %v3037_v53  ;;  %v1271_v16 = vshll.u32 %v1270_v47, 16 }
 0x3da   : > { %v1282_v45 = vpop.xlane.xlu1 %1281  ;;  %v1380_v40 = vsel %vm1364_vm7, %v3439_v33, 0.0  ;;  %v1340_v4 = vcvt.f32.s32 %v2919_v61 }
 0x3db   : > { %v3049_v25 = vadd.s32 %v1215_v9, %v1213_v20  ;;  %v1283_v15 = vcvt.f32.s32 %v1282_v45  ;;  %vm1361_vm8 = vcmp.eq.s32.totalorder %v3445_v18, %v3043_v57  ;;  %1403 = vadd.xlane.f32.xlu1 %v1380_v40  ;;  %v1312_v9 = vcvt.f32.s32 %v2930_v41 }
 0x3dc   : > { %v1296_v58 = vpop.xlane.xlu0 %1295  ;;  %v1377_v56 = vsel %vm1361_vm8, %v2777_v13, 0.0  ;;  %v1326_v40 = vcvt.f32.s32 %v2934_v49  ;;  %v1341_v41 = vshll.u32 %v1340_v4, 16 }
 0x3dd   : > { %v3055_v5 = vadd.s32 %v1285_v37, %v1283_v15  ;;  %v1297_v44 = vcvt.f32.s32 %v1296_v58  ;;  %1397 = vadd.xlane.f32.xlu0 %v1377_v56  ;;  %vm1362_vm9 = vcmp.eq.s32.totalorder %v3445_v18, %v3049_v25  ;;  %v1313_v15 = vshll.u32 %v1312_v9, 16 }
 0x3de   : > { %v1254_v34 = vpop.xlane.xlu1 %1253  ;;  %v1378_v33 = vsel %vm1362_vm9, %v3437_v55, 0.0  ;;  %v1327_v47 = vshll.u32 %v1326_v40, 16 }
 0x3df   : > { %v3060_v21 = vadd.s32 %v1299_v7, %v1297_v44  ;;  %v1255_v36 = vcvt.f32.s32 %v1254_v34  ;;  %vm1367_vm10 = vcmp.eq.s32.totalorder %v3445_v18, %v3055_v5  ;;  %1399 = vadd.xlane.f32.xlu1 %v1378_v33 }
 0x3e0   : > { %v1268_v13 = vpop.xlane.xlu0 %1267  ;;  %v1383_v43 = vsel %vm1367_vm10, %v2880_v51, 0.0  ;;  %v1354_v51 = vcvt.f32.s32 %v2924_v6 }
 0x3e1   : > { %v3065_v42 = vadd.s32 %v1257_v12, %v1255_v36  ;;  %v1269_v2 = vcvt.f32.s32 %v1268_v13  ;;  %1409 = vadd.xlane.f32.xlu0 %v1383_v43  ;;  %vm1368_vm11 = vcmp.eq.s32.totalorder %v3445_v18, %v3060_v21 }
 0x3e2   : > { %v1338_v55 = vpop.xlane.xlu1 %1337  ;;  %v1384_v8 = vsel %vm1368_vm11, %v2872_v38, 0.0  ;;  %v1355_v56 = vshll.u32 %v1354_v51, 16 }
 0x3e3   : > { %v3072_v20 = vadd.s32 %v1271_v16, %v1269_v2  ;;  %vm1365_vm12 = vcmp.eq.s32.totalorder %v3445_v18, %v3065_v42  ;;  %1411 = vadd.xlane.f32.xlu1 %v1384_v8  ;;  %v1339_v23 = vcvt.f32.s32 %v1338_v55 }
 0x3e4   : > { %v1352_v37 = vpop.xlane.xlu0 %1351  ;;  %v1381_v45 = vsel %vm1365_vm12, %v3435_v26, 0.0 }
 0x3e5   : > { %1405 = vadd.xlane.f32.xlu0 %v1381_v45  ;;  %vm1366_vm13 = vcmp.eq.s32.totalorder %v3445_v18, %v3072_v20  ;;  %v1353_v7 = vcvt.f32.s32 %v1352_v37  ;;  %v3082_v44 = vadd.s32 %v1341_v41, %v1339_v23 }
 0x3e6   : > { %v1310_v38 = vpop.xlane.xlu1 %1309  ;;  %v1382_v61 = vsel %vm1366_vm13, %v3441_v29, 0.0 }
 0x3e7   : > { %v1311_v58 = vcvt.f32.s32 %v1310_v38  ;;  %1407 = vadd.xlane.f32.xlu1 %v1382_v61  ;;  %v3086_v34 = vadd.s32 %v1355_v56, %v1353_v7  ;;  %vm1371_vm0 = vcmp.eq.s32.totalorder %v3445_v18, %v3082_v44  ;;  %v1887_v61 = vpop.eup %1886  ;;  %1918 = vrcp.f32 %v3007_v28 }
 0x3e8   : > { %v1324_v6 = vpop.xlane.xlu0 %1323  ;;  %v1387_v36 = vsel %vm1371_vm0, %v2915_v22, 0.0  ;;  %v1889_v10 = vpop.eup %1888  ;;  %1920 = vlog2.f32 %v3002_v50  ;;  %v914_v7 = vmul.f32 0.6931472, %v1887_v61  ;;  %v910_v28 = vmul.f32 0.6931472, %v1885_v11 }
 0x3e9   : > { %v3084_v26 = vadd.s32 %v1313_v15, %v1311_v58  ;;  %v1325_v49 = vcvt.f32.s32 %v1324_v6  ;;  %vm1372_vm1 = vcmp.eq.s32.totalorder %v3445_v18, %v3086_v34  ;;  %v1891_v19 = vpop.eup %1890  ;;  %v1439_v61 = vcvt.s32.f32 %v3009_v0 }
 0x3ea   : > { %v1388_v13 = vsel %vm1372_vm1, %v2939_v59, 0.0  ;;  %v3104_v16 = vpop.xlane.xlu1 %899  ;;  %v1893_v15 = vpop.eup %1892 }
 0x3eb   : > { %v3088_v33 = vadd.s32 %v1327_v47, %v1325_v49  ;;  %vm1369_vm14 = vcmp.eq.s32.totalorder %v3445_v18, %v3084_v26  ;;  %v1895_v63 = vpop.eup %1894 }
 0x3ec   : > { %v1385_v29 = vsel %vm1369_vm14, %v2899_v32, 0.0  ;;  %v898_v32 = vpop.xlane.xlu0 %897  ;;  %v1897_v56 = vpop.eup %1896 }
 0x3ed   : > { %1413 = vadd.xlane.f32.xlu0 %v1385_v29  ;;  %vm1370_vm15 = vcmp.eq.s32.totalorder %v3445_v18, %v3088_v33  ;;  %1922 = vlog2.f32 %v898_v32  ;;  %v1899_v1 = vpop.eup %1898 }
 0x3ee   : > { %v1386_v12 = vsel %vm1370_vm15, %v2889_v39, 0.0  ;;  %v3108_v55 = vpop.xlane.xlu1 %903  ;;  %1924 = vrcp.f32 %v898_v32  ;;  %v1901_v49 = vpop.eup %1900 }
 0x3ef   : > { %1415 = vadd.xlane.f32.xlu1 %v1386_v12  ;;  %1926 = vrcp.f32 %v3002_v50  ;;  %v1903_v12 = vpop.eup %1902 }
 0x3f0   : > { %v3102_v43 = vpop.xlane.xlu0 %901  ;;  %1928 = vlog2.f32 %v3104_v16  ;;  %v1905_v32 = vpop.eup %1904 }
 0x3f1   : > { %1417 = vadd.xlane.f32.xlu0 %v1387_v36  ;;  %v3162_v36 = vmul.f32 0.6931472, %v1893_v15  ;;  %1930 = vrcp.f32 %v3104_v16  ;;  %v1907_v11 = vpop.eup %1906 }
 0x3f2   : > { %v1909_v16 = vpop.eup %1908  ;;  %1932 = vlog2.f32 %v3108_v55 }
 0x3f3   : > { %1419 = vadd.xlane.f32.xlu1 %v1388_v13  ;;  %v916_v13 = vmul.f32 0.6931472, %v1895_v63  ;;  %1934 = vrcp.f32 %v3108_v55  ;;  %v1440_v55 = vcvt.s32.f32 %v3018_v54 }
 0x3f4   : > { %v3106_v2 = vpop.xlane.xlu0 %905  ;;  %1936 = vlog2.f32 %v3102_v43 }
 0x3f5   : > { %1938 = vrcp.f32 %v3102_v43 }
 0x3f6   : > { %1940 = vlog2.f32 %v3106_v2 }
 0x3f8   : > { %v974_v8 = vpop.xlane.xlu0 %973 }
 0x3f9   : > { %v1005_v6 = vmul.f32 %v1891_v19, %v974_v8  ;;  %v3166_v8 = vmul.f32 0.6931472, %v1899_v1  ;;  %v3446_v19 = vld [vmem:[#allocation16_spill] sm:$0xff]  ;;  %v3186_v1 = vmul.f32 0.6931472, %v1905_v32 }
 0x3fc   : > { %v3110_v39 = vpop.xlane.xlu1 %907  ;;  %v978_v9 = vpop.xlane.xlu0 %977 }
 0x3fd   : > { %v1007_v41 = vmul.f32 %v1889_v10, %v978_v9  ;;  %v1021_v10 = vsub.f32 %v910_v28, %v1005_v6 }
 0x3ff   : > { %v1023_v47 = vsub.f32 %v914_v7, %v1007_v41 }
 0x400   : > { %v3112_v4 = vpop.xlane.xlu1 %975  ;;  %v3114_v51 = vpop.xlane.xlu0 %981 }
 0x401   : > { %v1458_v41 = vsel %vm1455_vm2, %v1023_v47, %v3446_v19  ;;  %v1006_v15 = vmul.f32 %v1901_v49, %v3112_v4  ;;  %v1437_v19 = vcvt.s32.f32 %v3016_v60  ;;  %v922_v4 = vmul.f32 0.6931472, %v1907_v11  ;;  %v3448_v11 = vld [vmem:[#allocation17_spill] sm:$0xff] }
 0x403   : > { %v1022_v60 = vsub.f32 %v3162_v36, %v1006_v15 }
 0x404   : > { %v980_v22 = vpop.xlane.xlu1 %979  ;;  %v3118_v37 = vpop.xlane.xlu0 %985 }
 0x405   : > { %v1008_v29 = vmul.f32 %v1897_v56, %v980_v22  ;;  %v1011_v56 = vmul.f32 %v1909_v16, %v3118_v37  ;;  %v3447_v37 = vld [vmem:[#allocation14_spill] sm:$0xff] }
 0x406   : > { %v1456_v32 = vsel %vm1455_vm2, %v1021_v10, %v3447_v37 }
 0x407   : > { %v1024_v63 = vsub.f32 %v916_v13, %v1008_v29  ;;  %v1027_v10 = vsub.f32 %v922_v4, %v1011_v56  ;;  %v1443_v56 = vcvt.s32.f32 %v3031_v17 }
 0x408   : > { %v3116_v59 = vpop.xlane.xlu1 %983  ;;  %v3123_v40 = vpop.xlane.xlu0 %989 }
 0x409   : > { %v1459_v16 = vsel %vm1455_vm2, %v1024_v63, %v3448_v11  ;;  %v1438_v63 = vcvt.s32.f32 %v3027_v62 }
 0x40c   : > { %v3120_v45 = vpop.xlane.xlu1 %987  ;;  %v3133_v38 = vpop.xlane.xlu0 %993 }
 0x410   : > { %v3130_v23 = vpop.xlane.xlu1 %991  ;;  %v3144_v52 = vpop.xlane.xlu0 %997 }
 0x414   : > { %v3141_v24 = vpop.xlane.xlu1 %995  ;;  %v3156_v58 = vpop.xlane.xlu0 %1001 }
 0x418   : > { %v3151_v30 = vpop.xlane.xlu1 %999 }
 0x41c   : > { %v3168_v50 = vpop.xlane.xlu1 %1003 }
 0x458   : > { %v1394_v9 = vpop.xlane.xlu0 %1393 }
 0x459   : > { %v1423_v22 = vsub.f32 %v1394_v9, %v914_v7  ;;  %v1911_v7 = vpop.eup %1910  ;;  %1942 = vrcp.f32 %v3106_v2 }
 0x45a   : > { %v1913_v9 = vpop.eup %1912  ;;  %1944 = vlog2.f32 %v3110_v39 }
 0x45b   : > { %v1474_v0 = vsel %vm1454_vm3, %v1423_v22, %v1458_v41  ;;  %v1915_v22 = vpop.eup %1914  ;;  %1946 = vrcp.f32 %v3110_v39 }
 0x45c   : > { %v1490_v6 = vsel %vm1453_vm4, %v1439_v61, %v1474_v0  ;;  %v1390_v47 = vpop.xlane.xlu0 %1389  ;;  %v1396_v49 = vpop.xlane.xlu1 %1395  ;;  %v1009_v0 = vmul.f32 %v1903_v12, %v3114_v51 }
 0x45d   : > { %1507 = vst.msk [vmem:[%s3178_s15 + $0x10] sm:$0xff] %vm1504_vm5, %v1490_v6  ;;  %v1421_v29 = vsub.f32 %v1390_v47, %v910_v28  ;;  %v1424_v61 = vsub.f32 %v1396_v49, %v916_v13  ;;  %v3199_v41 = vpop.eup %1916  ;;  %v1012_v28 = vmul.f32 %v1915_v22, %v3120_v45  ;;  %v924_v45 = vmul.f32 0.6931472, %v1913_v9  ;;  %v3449_v9 = vld [vmem:[#allocation15_spill] sm:$0xff] }
 0x45e   : > { %v1919_v43 = vpop.eup %1918  ;;  %v1444_v49 = vcvt.s32.f32 %v3037_v53  ;;  %v1457_v22 = vsel %vm1455_vm2, %v1022_v60, %v3449_v9  ;;  %v1025_v53 = vsub.f32 %v3166_v8, %v1009_v0  ;;  %v1441_v60 = vcvt.s32.f32 %v3043_v57 }
 0x45f   : > { %v1472_v54 = vsel %vm1454_vm3, %v1421_v29, %v1456_v32  ;;  %v1475_v13 = vsel %vm1454_vm3, %v1424_v61, %v1459_v16  ;;  %v3213_v6 = vpop.eup %1920  ;;  %v1028_v37 = vsub.f32 %v924_v45, %v1012_v28  ;;  %v3450_v61 = vld [vmem:[#allocation20_spill] sm:$0xff]  ;;  %v1442_v9 = vcvt.s32.f32 %v3049_v25 }
 0x460   : > { %v1488_v15 = vsel %vm1453_vm4, %v1437_v19, %v1472_v54  ;;  %v1491_v47 = vsel %vm1453_vm4, %v1440_v55, %v1475_v13  ;;  %v1392_v51 = vpop.xlane.xlu1 %1391  ;;  %v1923_v12 = vpop.eup %1922  ;;  %v1010_v55 = vmul.f32 %v1911_v7, %v3116_v59  ;;  %v1462_v2 = vsel %vm1455_vm2, %v1027_v10, %v3450_v61 }
 0x461   : > { %1505 = vst.msk [vmem:[%s3178_s15] sm:$0xff] %vm1504_vm5, %v1488_v15  ;;  %1508 = vst.msk [vmem:[%s3178_s15 + $0x18] sm:$0xff] %vm1504_vm5, %v1491_v47  ;;  %v1422_v62 = vsub.f32 %v1392_v51, %v3162_v36  ;;  %v1925_v29 = vpop.eup %1924  ;;  %v1463_v13 = vsel %vm1455_vm2, %v1028_v37, %v2967_v14  ;;  %v3451_v47 = vld [vmem:[#allocation18_spill] sm:$0xff] }
 0x462   : > { %v1402_v19 = vpop.xlane.xlu0 %1401  ;;  %v1927_v17 = vpop.eup %1926  ;;  %v1015_v36 = vmul.f32 %v1925_v29, %v3133_v38  ;;  %v930_v38 = vmul.f32 0.6931472, %v1923_v12  ;;  %v1026_v10 = vsub.f32 %v3186_v1, %v1010_v55  ;;  %v1460_v51 = vsel %vm1455_vm2, %v1025_v53, %v3451_v47 }
 0x463   : > { %v1427_v32 = vsub.f32 %v1402_v19, %v922_v4  ;;  %v1473_v11 = vsel %vm1454_vm3, %v1422_v62, %v1457_v22  ;;  %v1929_v16 = vpop.eup %1928  ;;  %v926_v22 = vmul.f32 0.6931472, %v3199_v41  ;;  %v1014_v53 = vmul.f32 %v1927_v17, %v3130_v23 }
 0x464   : > { %v1489_v59 = vsel %vm1453_vm4, %v1438_v63, %v1473_v11  ;;  %v1404_v4 = vpop.xlane.xlu1 %1403  ;;  %v1931_v28 = vpop.eup %1930  ;;  %v1031_v12 = vsub.f32 %v930_v38, %v1015_v36  ;;  %v932_v14 = vmul.f32 0.6931472, %v1929_v16  ;;  %v1447_v41 = vcvt.s32.f32 %v3055_v5 }
 0x465   : > { %v1478_v7 = vsel %vm1454_vm3, %v1427_v32, %v1462_v2  ;;  %1506 = vst.msk [vmem:[%s3178_s15 + $0x8] sm:$0xff] %vm1504_vm5, %v1489_v59  ;;  %v1428_v0 = vsub.f32 %v1404_v4, %v924_v45  ;;  %v1016_v15 = vmul.f32 %v1931_v28, %v3141_v24  ;;  %v1933_v63 = vpop.eup %1932  ;;  %v1013_v45 = vmul.f32 %v1919_v43, %v3123_v40 }
 0x466   : > { %v1494_v54 = vsel %vm1453_vm4, %v1443_v56, %v1478_v7  ;;  %v1398_v57 = vpop.xlane.xlu0 %1397  ;;  %v1935_v62 = vpop.eup %1934  ;;  %v928_v11 = vmul.f32 0.6931472, %v3213_v6  ;;  %v1448_v4 = vcvt.s32.f32 %v3060_v21 }
 0x467   : > { %1511 = vst.msk [vmem:[%s3178_s15 + $0x30] sm:$0xff] %vm1504_vm5, %v1494_v54  ;;  %v1425_v39 = vsub.f32 %v1398_v57, %v3166_v8  ;;  %v1479_v56 = vsel %vm1454_vm3, %v1428_v0, %v1463_v13  ;;  %v1937_v29 = vpop.eup %1936  ;;  %v1032_v61 = vsub.f32 %v932_v14, %v1016_v15  ;;  %v1029_v2 = vsub.f32 %v926_v22, %v1013_v45 }
 0x468   : > { %v1495_v24 = vsel %vm1453_vm4, %v1444_v49, %v1479_v56  ;;  %v1400_v19 = vpop.xlane.xlu1 %1399  ;;  %v1939_v37 = vpop.eup %1938  ;;  %v3452_v49 = vld [vmem:[#allocation19_spill] sm:$0xff]  ;;  %v1030_v6 = vsub.f32 %v928_v11, %v1014_v53  ;;  %v1445_v54 = vcvt.s32.f32 %v3065_v42  ;;  %v1018_v42 = vmul.f32 %v1935_v62, %v3151_v30 }
 0x469   : > { %v1476_v8 = vsel %vm1454_vm3, %v1425_v39, %v1460_v51  ;;  %1512 = vst.msk [vmem:[%s3178_s15 + $0x38] sm:$0xff] %vm1504_vm5, %v1495_v24  ;;  %v1426_v43 = vsub.f32 %v1400_v19, %v3186_v1  ;;  %v1461_v32 = vsel %vm1455_vm2, %v1026_v10, %v3452_v49  ;;  %v1466_v1 = vsel %vm1455_vm2, %v1031_v12, %v2976_v3 }
 0x46a   : > { %v1492_v40 = vsel %vm1453_vm4, %v1441_v60, %v1476_v8  ;;  %v1410_v55 = vpop.xlane.xlu0 %1409  ;;  %v1941_v60 = vpop.eup %1940  ;;  %v1467_v28 = vsel %vm1455_vm2, %v1032_v61, %v2974_v27  ;;  %v1464_v0 = vsel %vm1455_vm2, %v1029_v2, %v2972_v35  ;;  %v1017_v57 = vmul.f32 %v1939_v37, %v3144_v52 }
 0x46b   : > { %1509 = vst.msk [vmem:[%s3178_s15 + $0x20] sm:$0xff] %vm1504_vm5, %v1492_v40  ;;  %v1431_v25 = vsub.f32 %v1410_v55, %v930_v38  ;;  %v1477_v36 = vsel %vm1454_vm3, %v1426_v43, %v1461_v32  ;;  %v1943_v7 = vpop.eup %1942  ;;  %v934_v39 = vmul.f32 0.6931472, %v1937_v29  ;;  %v1446_v51 = vcvt.s32.f32 %v3072_v20 }
 0x46c   : > { %v1493_v23 = vsel %vm1453_vm4, %v1442_v9, %v1477_v36  ;;  %v1412_v16 = vpop.xlane.xlu1 %1411  ;;  %v1945_v15 = vpop.eup %1944  ;;  %v1465_v45 = vsel %vm1455_vm2, %v1030_v6, %v2970_v48  ;;  %v1019_v56 = vmul.f32 %v1943_v7, %v3156_v58  ;;  %v936_v30 = vmul.f32 0.6931472, %v1933_v63  ;;  %v3454_v36 = vld [vmem:[#allocation25_spill] sm:$0xff] }
 0x46d   : > { %v1482_v17 = vsel %vm1454_vm3, %v1431_v25, %v1466_v1  ;;  %1510 = vst.msk [vmem:[%s3178_s15 + $0x28] sm:$0xff] %vm1504_vm5, %v1493_v23  ;;  %v1432_v59 = vsub.f32 %v1412_v16, %v932_v14  ;;  %v1947_v47 = vpop.eup %1946  ;;  %v1033_v12 = vsub.f32 %v934_v39, %v1017_v57  ;;  %v938_v24 = vmul.f32 0.6931472, %v1941_v60 }
 0x46e   : > { %v1498_v5 = vsel %vm1453_vm4, %v1447_v41, %v1482_v17  ;;  %v1406_v3 = vpop.xlane.xlu0 %1405  ;;  %v1034_v8 = vsub.f32 %v936_v30, %v1018_v42  ;;  %v1020_v20 = vmul.f32 %v1947_v47, %v3168_v50  ;;  %v1449_v29 = vcvt.s32.f32 %v3084_v26 }
 0x46f   : > { %1515 = vst.msk [vmem:[%s3178_s15 + $0x50] sm:$0xff] %vm1504_vm5, %v1498_v5  ;;  %v1429_v38 = vsub.f32 %v1406_v3, %v926_v22  ;;  %v1483_v21 = vsel %vm1454_vm3, %v1432_v59, %v1467_v28  ;;  %v1468_v58 = vsel %vm1455_vm2, %v1033_v12, %v2980_v31  ;;  %v1035_v63 = vsub.f32 %v938_v24, %v1019_v56 }
 0x470   : > { %v1499_v10 = vsel %vm1453_vm4, %v1448_v4, %v1483_v21  ;;  %v1408_v13 = vpop.xlane.xlu1 %1407  ;;  %v940_v9 = vmul.f32 0.6931472, %v1945_v15  ;;  %v1450_v50 = vcvt.s32.f32 %v3088_v33  ;;  %v1469_v55 = vsel %vm1455_vm2, %v1034_v8, %v2978_v46  ;;  %v3453_v33 = vld [vmem:[#allocation23_spill] sm:$0xff] }
 0x471   : > { %v1480_v27 = vsel %vm1454_vm3, %v1429_v38, %v1464_v0  ;;  %1516 = vst.msk [vmem:[%s3178_s15 + $0x58] sm:$0xff] %vm1504_vm5, %v1499_v10  ;;  %v1430_v52 = vsub.f32 %v1408_v13, %v928_v11  ;;  %v1451_v53 = vcvt.s32.f32 %v3082_v44  ;;  %v1470_v61 = vsel %vm1455_vm2, %v1035_v63, %v3453_v33 }
 0x472   : > { %v1496_v35 = vsel %vm1453_vm4, %v1445_v54, %v1480_v27  ;;  %v1036_v37 = vsub.f32 %v940_v9, %v1020_v20  ;;  %v1452_v1 = vcvt.s32.f32 %v3086_v34 }
 0x473   : > { %1513 = vst.msk [vmem:[%s3178_s15 + $0x40] sm:$0xff] %vm1504_vm5, %v1496_v35  ;;  %v1481_v62 = vsel %vm1454_vm3, %v1430_v52, %v1465_v45 }
 0x474   : > { %v1497_v14 = vsel %vm1453_vm4, %v1446_v51, %v1481_v62  ;;  %v1471_v44 = vsel %vm1455_vm2, %v1036_v37, %v3454_v36 }
 0x475   : > { %1514 = vst.msk [vmem:[%s3178_s15 + $0x48] sm:$0xff] %vm1504_vm5, %v1497_v14 }
 0x476   : > { %v1414_v48 = vpop.xlane.xlu0 %1413 }
 0x477   : > { %v1433_v19 = vsub.f32 %v1414_v48, %v934_v39 }
 0x478   : > { %v1416_v22 = vpop.xlane.xlu1 %1415 }
 0x479   : > { %v1484_v40 = vsel %vm1454_vm3, %v1433_v19, %v1468_v58  ;;  %v1434_v43 = vsub.f32 %v1416_v22, %v936_v30 }
 0x47a   : > { %v1500_v26 = vsel %vm1453_vm4, %v1449_v29, %v1484_v40  ;;  %v1418_v31 = vpop.xlane.xlu0 %1417 }
 0x47b   : > { %1517 = vst.msk [vmem:[%s3178_s15 + $0x60] sm:$0xff] %vm1504_vm5, %v1500_v26  ;;  %v1485_v49 = vsel %vm1454_vm3, %v1434_v43, %v1469_v55  ;;  %v1435_v32 = vsub.f32 %v1418_v31, %v938_v24 }
 0x47c   : > { %v1501_v46 = vsel %vm1453_vm4, %v1450_v50, %v1485_v49  ;;  %v1420_v25 = vpop.xlane.xlu1 %1419 }
 0x47d   : > { %1518 = vst.msk [vmem:[%s3178_s15 + $0x68] sm:$0xff] %vm1504_vm5, %v1501_v46  ;;  %v1486_v41 = vsel %vm1454_vm3, %v1435_v32, %v1470_v61  ;;  %v1436_v2 = vsub.f32 %v1420_v25, %v940_v9 }
 0x47e   : > { %v1502_v11 = vsel %vm1453_vm4, %v1451_v53, %v1486_v41 }
 0x47f   : > { %1519 = vst.msk [vmem:[%s3178_s15 + $0x70] sm:$0xff] %vm1504_vm5, %v1502_v11  ;;  %v1487_v23 = vsel %vm1454_vm3, %v1436_v2, %v1471_v44 }
 0x480   : > { %v1503_v17 = vsel %vm1453_vm4, %v1452_v1, %v1487_v23 }
 0x481   : > { %1520 = vst.msk [vmem:[%s3178_s15 + $0x78] sm:$0xff] %vm1504_vm5, %v1503_v17 }
 0x482 PF: > { %s3455_s24 = smov %s2220_s21  ;;  %p20_p0 = scmp.ge.s32.totalorder %s2209_s17, 4  }
 0x483   : > { %s3456_s21 = smov %s2094_s22  ;;  %s3457_s22 = smov %s2098_s23 }
 0x484   : > { %s3458_s23 = smov %s3455_s24  ;;  %s3459_s24 = smov %s2209_s17 }
 0x485   :  { %22 = sbr.rel (!%p20_p0) target bundleno = 6 (0x6), region = 105 }
 0x48a   :  { %1543 = vsyncpa [#allocation3], 1 }
 0x48b   :  { %1545 = vsyncpa [#allocation3 + $0x1], 1 }
 0x48c   :  { %1546 = vsyncpa [#allocation5], 1 }
 0x48d   :  { %1548 = vsyncpa [#allocation5 + $0x1], 1 }
 0x48e   :  { %1549 = vsyncpa [#allocation8], 1 }

</bundles_post_ra>
